<compile_context>
chip_gen: v6e
topology: v6e:2x2x1
jax: 0.10.0
libtpu: 0.0.40
codegen_flags: <defaults>
</compile_context>

<pallas_src>
import jax
import jax.numpy as jnp
from jax.experimental import pallas as pl
from jax.experimental.pallas import tpu as pltpu


def _round_up(x, m):
    return (x + m - 1) // m * m


def _proj_encoder_kernel(x_ref, wp_ref, w1_ref, b1_ref, w2_ref, b2_ref,
                         emb_ref, enc_ref):
    # x_ref:  (tm, Dp)   tile of flattened (padded) input rows
    # wp_ref: (Dp, Hp)   projection weight (no bias)
    # w1_ref: (Hp, Hp), b1_ref: (1, Hp)   first Linear of f
    # w2_ref: (Hp, Hp), b2_ref: (1, Hp)   second Linear of f
    # Native-dtype operands go straight to the MXU; accumulate in f32.
    emb = jnp.dot(x_ref[...], wp_ref[...], preferred_element_type=jnp.float32)
    emb_ref[...] = emb.astype(emb_ref.dtype)

    # f(emb) = ReLU(Linear2(ReLU(Linear1(emb))))   (dropout = identity in eval)
    h1 = jnp.dot(emb.astype(w1_ref.dtype), w1_ref[...],
                 preferred_element_type=jnp.float32) + b1_ref[...]
    h1 = jnp.maximum(h1, 0.0)
    h2 = jnp.dot(h1.astype(w2_ref.dtype), w2_ref[...],
                 preferred_element_type=jnp.float32) + b2_ref[...]
    h2 = jnp.maximum(h2, 0.0)
    enc_ref[...] = h2.astype(enc_ref.dtype)


def _proj_encoder_2d(x2d, wp, w1, b1, w2, b2, *, tm_max=256):
    """x2d: (N, D_in) -> (emb (N, H), enc (N, H)) via one pallas_call."""
    N, D = x2d.shape
    H = wp.shape[1]

    # Lane-dense padding of the feature dims (exact: zero rows/cols contribute 0).
    Dp = _round_up(D, 128)
    Hp = _round_up(H, 128)

    # Row tile: as large as possible for MXU M-utilization / fewer grid steps,
    # but keep >= 2 grid steps when N allows (both v7x TensorCores get work).
    tm = min(tm_max, _round_up(max(-(-N // 2), 16), 16))
    Np = _round_up(N, tm)
    grid = (Np // tm,)

    xp = jnp.pad(x2d, ((0, Np - N), (0, Dp - D)))
    wpp = jnp.pad(wp, ((0, Dp - D), (0, Hp - H)))
    w1p = jnp.pad(w1, ((0, Hp - H), (0, Hp - H)))
    w2p = jnp.pad(w2, ((0, Hp - H), (0, Hp - H)))
    b1p = jnp.pad(b1, ((0, 0), (0, Hp - H)))
    b2p = jnp.pad(b2, ((0, 0), (0, Hp - H)))

    x_item = jnp.dtype(x2d.dtype).itemsize
    w_item = jnp.dtype(wp.dtype).itemsize
    w_bytes = (Dp * Hp + 2 * Hp * Hp + 2 * Hp) * w_item
    # x + emb + enc double-buffered, weights (worst case double-buffered),
    # plus f32 intermediates; generous 2x margin, floor at 16 MiB (v7x-safe).
    need = (2 * tm * Dp * x_item + 4 * tm * Hp * x_item
            + 2 * w_bytes + 3 * tm * Hp * 4)
    vmem_limit = int(max(2 * need + (2 << 20), 16 << 20))

    flops = 2.0 * Np * (Dp * Hp + 2.0 * Hp * Hp)
    bytes_accessed = (Np * Dp * x_item + w_bytes + 2 * Np * Hp * x_item)
    cost = pl.CostEstimate(flops=int(flops), transcendentals=0,
                           bytes_accessed=int(bytes_accessed))

    def _weight_spec(shape, single_buffer):
        idx = lambda i: (0,) * len(shape)
        if single_buffer:
            return pl.BlockSpec(shape, idx, pipeline_mode=pl.Buffered(1))
        return pl.BlockSpec(shape, idx)

    def _run(single_buffer_weights):
        emb_p, enc_p = pl.pallas_call(
            _proj_encoder_kernel,
            out_shape=(jax.ShapeDtypeStruct((Np, Hp), x2d.dtype),
                       jax.ShapeDtypeStruct((Np, Hp), x2d.dtype)),
            grid_spec=pltpu.PrefetchScalarGridSpec(
                num_scalar_prefetch=0,
                grid=grid,
                in_specs=[
                    pl.BlockSpec((tm, Dp), lambda i: (i, 0)),          # x rows
                    _weight_spec((Dp, Hp), single_buffer_weights),     # Wp
                    _weight_spec((Hp, Hp), single_buffer_weights),     # W1
                    _weight_spec((1, Hp), single_buffer_weights),      # b1
                    _weight_spec((Hp, Hp), single_buffer_weights),     # W2
                    _weight_spec((1, Hp), single_buffer_weights),      # b2
                ],
                out_specs=[
                    pl.BlockSpec((tm, Hp), lambda i: (i, 0)),          # emb
                    pl.BlockSpec((tm, Hp), lambda i: (i, 0)),          # enc
                ],
            ),
            compiler_params=pltpu.CompilerParams(
                dimension_semantics=("parallel",),
                vmem_limit_bytes=vmem_limit),
            cost_estimate=cost,
        )(xp, wpp, w1p, b1p, w2p, b2p)
        return emb_p, enc_p

    try:
        emb_p, enc_p = _run(True)
        jax.block_until_ready((emb_p, enc_p))
    except Exception:
        # Fallback for jax versions where pipeline_mode=pl.Buffered(1) is not
        # supported for pallas_call BlockSpecs: use default double buffering.
        emb_p, enc_p = _run(False)

    return emb_p[:N, :H], enc_p[:N, :H]


def proj_encoder_forward(sent1, sent2, params, *, tm_max=256):
    """Mirrors ProjEncoder.forward.

    sent1: (B, L1, word_vec_size), sent2: (B, L2, word_vec_size)
    Returns [input_emb1, input_emb2, input_enc1, input_enc2] with shapes
    (B, L1, H), (B, L2, H), (B, L1, H), (B, L2, H).
    """
    B, L1, D = sent1.shape
    B2, L2, D2 = sent2.shape
    H = params["wp"].shape[1]
    n1, n2 = B * L1, B2 * L2

    # One kernel launch for both sentences: weights stay VMEM-resident.
    x = jnp.concatenate([sent1.reshape(n1, D), sent2.reshape(n2, D2)], axis=0)
    emb, enc = _proj_encoder_2d(
        x, params["wp"], params["w1"], params["b1"], params["w2"], params["b2"],
        tm_max=tm_max)

    return [emb[:n1].reshape(B, L1, H),
            emb[n1:].reshape(B2, L2, H),
            enc[:n1].reshape(B, L1, H),
            enc[n1:].reshape(B2, L2, H)]


def init_params(key, word_vec_size, hidden_size, dtype=jnp.float32):
    """Deterministic parameter init (PyTorch Linear weights pre-transposed to (in, out))."""
    k_p, k_1, kb1, k_2, kb2 = jax.random.split(key, 5)
    s_p = 1.0 / jnp.sqrt(word_vec_size)
    s_h = 1.0 / jnp.sqrt(hidden_size)
    return {
        "wp": jax.random.uniform(k_p, (word_vec_size, hidden_size), dtype, -s_p, s_p),
        "w1": jax.random.uniform(k_1, (hidden_size, hidden_size), dtype, -s_h, s_h),
        "b1": jax.random.uniform(kb1, (1, hidden_size), dtype, -s_h, s_h),
        "w2": jax.random.uniform(k_2, (hidden_size, hidden_size), dtype, -s_h, s_h),
        "b2": jax.random.uniform(kb2, (1, hidden_size), dtype, -s_h, s_h),
    }


def _reference(sent1, sent2, p):
    def f(x2d):
        emb = x2d @ p["wp"]
        h1 = jnp.maximum(emb @ p["w1"] + p["b1"], 0.0)
        enc = jnp.maximum(h1 @ p["w2"] + p["b2"], 0.0)
        return emb, enc
    B, L1, D = sent1.shape
    _, L2, _ = sent2.shape
    H = p["wp"].shape[1]
    e1, c1 = f(sent1.reshape(B * L1, D))
    e2, c2 = f(sent2.reshape(B * L2, D))
    return [e1.reshape(B, L1, H), e2.reshape(B, L2, H),
            c1.reshape(B, L1, H), c2.reshape(B, L2, H)]


if __name__ == "__main__":
    # Small, module-consistent shapes: batch=2, seq lens 8 and 16,
    # word_vec_size=32, hidden_size=32.
    B, L1, L2 = 2, 8, 16
    word_vec_size, hidden_size = 32, 32

    key = jax.random.PRNGKey(0)
    k_s1, k_s2, k_p = jax.random.split(key, 3)
    sent1 = jax.random.normal(k_s1, (B, L1, word_vec_size), jnp.float32)
    sent2 = jax.random.normal(k_s2, (B, L2, word_vec_size), jnp.float32)
    params = init_params(k_p, word_vec_size, hidden_size)

    # TODO(synk): training-mode Dropout (stochastic masking) not implemented;
    # eval-mode (identity) semantics are used.
    outs = proj_encoder_forward(sent1, sent2, params)
    outs = [jax.block_until_ready(o) for o in outs]

    refs = _reference(sent1, sent2, params)
    for o, r in zip(outs, refs):
        assert o.shape == r.shape
        assert jnp.allclose(o, r, atol=1e-5, rtol=1e-5)

    print("KERNEL_OK")
</pallas_src>

<mosaic_0001>
module attributes {stable_mosaic.version = 11 : i64} {
  func.func @_proj_encoder_kernel(%arg0: i32, %arg1: memref<32x128xf32, #tpu.memory_space<vmem>>, %arg2: memref<128x128xf32, #tpu.memory_space<vmem>>, %arg3: memref<128x128xf32, #tpu.memory_space<vmem>>, %arg4: memref<1x128xf32, #tpu.memory_space<vmem>>, %arg5: memref<128x128xf32, #tpu.memory_space<vmem>>, %arg6: memref<1x128xf32, #tpu.memory_space<vmem>>, %arg7: memref<32x128xf32, #tpu.memory_space<vmem>>, %arg8: memref<32x128xf32, #tpu.memory_space<vmem>>) attributes {dimension_semantics = [#tpu.dimension_semantics<parallel>], iteration_bounds = array<i64: 2>, scalar_prefetch = 0 : i64, scratch_operands = 0 : i64, tpu.core_type = #tpu.core_type<tc>, window_params = [{transform_indices = @transform_0, window_bounds = array<i64: 32, 128>}, {pipeline_mode = #tpu.pipeline_mode<synchronous>, transform_indices = @transform_1, window_bounds = array<i64: 128, 128>}, {pipeline_mode = #tpu.pipeline_mode<synchronous>, transform_indices = @transform_2, window_bounds = array<i64: 128, 128>}, {pipeline_mode = #tpu.pipeline_mode<synchronous>, transform_indices = @transform_3, window_bounds = array<i64: 1, 128>}, {pipeline_mode = #tpu.pipeline_mode<synchronous>, transform_indices = @transform_4, window_bounds = array<i64: 128, 128>}, {pipeline_mode = #tpu.pipeline_mode<synchronous>, transform_indices = @transform_5, window_bounds = array<i64: 1, 128>}, {transform_indices = @transform_6, window_bounds = array<i64: 32, 128>}, {transform_indices = @transform_7, window_bounds = array<i64: 32, 128>}]} {
    %c0 = arith.constant 0 : index
    %c0_0 = arith.constant 0 : index
    %0 = vector.load %arg1[%c0, %c0_0] : memref<32x128xf32, #tpu.memory_space<vmem>>, vector<32x128xf32>
    %c0_1 = arith.constant 0 : index
    %c0_2 = arith.constant 0 : index
    %1 = vector.load %arg2[%c0_1, %c0_2] : memref<128x128xf32, #tpu.memory_space<vmem>>, vector<128x128xf32>
    %cst = arith.constant dense<0.000000e+00> : vector<32x128xf32>
    %2 = tpu.matmul %0, %1, %cst {dimension_numbers = #tpu.dot_dimension_numbers<[1], [0], [0], [1], [0, 0, 1, 1], [], []>} : vector<32x128xf32>, vector<128x128xf32>, vector<32x128xf32> -> vector<32x128xf32>
    %c0_3 = arith.constant 0 : index
    %c0_4 = arith.constant 0 : index
    %3 = vector.load %arg7[%c0_3, %c0_4] : memref<32x128xf32, #tpu.memory_space<vmem>>, vector<32x128xf32>
    tpu.vector_store %arg7[%c0_3, %c0_4], %2 {strides = array<i32>} : memref<32x128xf32, #tpu.memory_space<vmem>>, vector<32x128xf32>,
    %c0_5 = arith.constant 0 : index
    %c0_6 = arith.constant 0 : index
    %4 = vector.load %arg3[%c0_5, %c0_6] : memref<128x128xf32, #tpu.memory_space<vmem>>, vector<128x128xf32>
    %cst_7 = arith.constant dense<0.000000e+00> : vector<32x128xf32>
    %5 = tpu.matmul %2, %4, %cst_7 {dimension_numbers = #tpu.dot_dimension_numbers<[1], [0], [0], [1], [0, 0, 1, 1], [], []>} : vector<32x128xf32>, vector<128x128xf32>, vector<32x128xf32> -> vector<32x128xf32>
    %c0_8 = arith.constant 0 : index
    %c0_9 = arith.constant 0 : index
    %6 = vector.load %arg4[%c0_8, %c0_9] : memref<1x128xf32, #tpu.memory_space<vmem>>, vector<1x128xf32>
    %7 = vector.broadcast %6 : vector<1x128xf32> to vector<32x128xf32>
    %8 = arith.addf %5, %7 : vector<32x128xf32>
    %cst_10 = arith.constant 0.000000e+00 : f32
    %9 = vector.broadcast %cst_10 : f32 to vector<32x128xf32>
    %10 = arith.maximumf %8, %9 : vector<32x128xf32>
    %c0_11 = arith.constant 0 : index
    %c0_12 = arith.constant 0 : index
    %11 = vector.load %arg5[%c0_11, %c0_12] : memref<128x128xf32, #tpu.memory_space<vmem>>, vector<128x128xf32>
    %cst_13 = arith.constant dense<0.000000e+00> : vector<32x128xf32>
    %12 = tpu.matmul %10, %11, %cst_13 {dimension_numbers = #tpu.dot_dimension_numbers<[1], [0], [0], [1], [0, 0, 1, 1], [], []>} : vector<32x128xf32>, vector<128x128xf32>, vector<32x128xf32> -> vector<32x128xf32>
    %c0_14 = arith.constant 0 : index
    %c0_15 = arith.constant 0 : index
    %13 = vector.load %arg6[%c0_14, %c0_15] : memref<1x128xf32, #tpu.memory_space<vmem>>, vector<1x128xf32>
    %14 = vector.broadcast %13 : vector<1x128xf32> to vector<32x128xf32>
    %15 = arith.addf %12, %14 : vector<32x128xf32>
    %cst_16 = arith.constant 0.000000e+00 : f32
    %16 = vector.broadcast %cst_16 : f32 to vector<32x128xf32>
    %17 = arith.maximumf %15, %16 : vector<32x128xf32>
    %c0_17 = arith.constant 0 : index
    %c0_18 = arith.constant 0 : index
    %18 = vector.load %arg8[%c0_17, %c0_18] : memref<32x128xf32, #tpu.memory_space<vmem>>, vector<32x128xf32>
    tpu.vector_store %arg8[%c0_17, %c0_18], %17 {strides = array<i32>} : memref<32x128xf32, #tpu.memory_space<vmem>>, vector<32x128xf32>,
    return
  }
  func.func @transform_0(%arg0: i32) -> (i32, i32) {
    %c0_i32 = arith.constant 0 : i32
    %c0_i32_0 = arith.constant 0 : i32
    return %arg0, %c0_i32 : i32, i32
  }
  func.func @transform_1(%arg0: i32) -> (i32, i32) {
    %c0_i32 = arith.constant 0 : i32
    %c0_i32_0 = arith.constant 0 : i32
    %c0_i32_1 = arith.constant 0 : i32
    return %c0_i32, %c0_i32_0 : i32, i32
  }
  func.func @transform_2(%arg0: i32) -> (i32, i32) {
    %c0_i32 = arith.constant 0 : i32
    %c0_i32_0 = arith.constant 0 : i32
    %c0_i32_1 = arith.constant 0 : i32
    return %c0_i32, %c0_i32_0 : i32, i32
  }
  func.func @transform_3(%arg0: i32) -> (i32, i32) {
    %c0_i32 = arith.constant 0 : i32
    %c0_i32_0 = arith.constant 0 : i32
    %c0_i32_1 = arith.constant 0 : i32
    return %c0_i32, %c0_i32_0 : i32, i32
  }
  func.func @transform_4(%arg0: i32) -> (i32, i32) {
    %c0_i32 = arith.constant 0 : i32
    %c0_i32_0 = arith.constant 0 : i32
    %c0_i32_1 = arith.constant 0 : i32
    return %c0_i32, %c0_i32_0 : i32, i32
  }
  func.func @transform_5(%arg0: i32) -> (i32, i32) {
    %c0_i32 = arith.constant 0 : i32
    %c0_i32_0 = arith.constant 0 : i32
    %c0_i32_1 = arith.constant 0 : i32
    return %c0_i32, %c0_i32_0 : i32, i32
  }
  func.func @transform_6(%arg0: i32) -> (i32, i32) {
    %c0_i32 = arith.constant 0 : i32
    %c0_i32_0 = arith.constant 0 : i32
    return %arg0, %c0_i32 : i32, i32
  }
  func.func @transform_7(%arg0: i32) -> (i32, i32) {
    %c0_i32 = arith.constant 0 : i32
    %c0_i32_0 = arith.constant 0 : i32
    return %arg0, %c0_i32 : i32, i32
  }
}

module attributes {stable_mosaic.version = 11 : i64} {
  func.func @_proj_encoder_kernel(%arg0: i32, %arg1: memref<32x128xf32, #tpu.memory_space<vmem>>, %arg2: memref<128x128xf32, #tpu.memory_space<vmem>>, %arg3: memref<128x128xf32, #tpu.memory_space<vmem>>, %arg4: memref<1x128xf32, #tpu.memory_space<vmem>>, %arg5: memref<128x128xf32, #tpu.memory_space<vmem>>, %arg6: memref<1x128xf32, #tpu.memory_space<vmem>>, %arg7: memref<32x128xf32, #tpu.memory_space<vmem>>, %arg8: memref<32x128xf32, #tpu.memory_space<vmem>>) attributes {dimension_semantics = [#tpu.dimension_semantics<parallel>], iteration_bounds = array<i64: 2>, scalar_prefetch = 0 : i64, scratch_operands = 0 : i64, tpu.core_type = #tpu.core_type<tc>, window_params = [{transform_indices = @transform_0, window_bounds = array<i64: 32, 128>}, {pipeline_mode = #tpu.pipeline_mode<synchronous>, transform_indices = @transform_1, window_bounds = array<i64: 128, 128>}, {pipeline_mode = #tpu.pipeline_mode<synchronous>, transform_indices = @transform_2, window_bounds = array<i64: 128, 128>}, {pipeline_mode = #tpu.pipeline_mode<synchronous>, transform_indices = @transform_3, window_bounds = array<i64: 1, 128>}, {pipeline_mode = #tpu.pipeline_mode<synchronous>, transform_indices = @transform_4, window_bounds = array<i64: 128, 128>}, {pipeline_mode = #tpu.pipeline_mode<synchronous>, transform_indices = @transform_5, window_bounds = array<i64: 1, 128>}, {transform_indices = @transform_6, window_bounds = array<i64: 32, 128>}, {transform_indices = @transform_7, window_bounds = array<i64: 32, 128>}]} {
    %c0 = arith.constant 0 : index
    %c0_0 = arith.constant 0 : index
    %0 = vector.load %arg1[%c0, %c0_0] : memref<32x128xf32, #tpu.memory_space<vmem>>, vector<32x128xf32>
    %c0_1 = arith.constant 0 : index
    %c0_2 = arith.constant 0 : index
    %1 = vector.load %arg2[%c0_1, %c0_2] : memref<128x128xf32, #tpu.memory_space<vmem>>, vector<128x128xf32>
    %cst = arith.constant dense<0.000000e+00> : vector<32x128xf32>
    %2 = tpu.matmul %0, %1, %cst {dimension_numbers = #tpu.dot_dimension_numbers<[1], [0], [0], [1], [0, 0, 1, 1], [], []>} : vector<32x128xf32>, vector<128x128xf32>, vector<32x128xf32> -> vector<32x128xf32>
    %c0_3 = arith.constant 0 : index
    %c0_4 = arith.constant 0 : index
    %3 = vector.load %arg7[%c0_3, %c0_4] : memref<32x128xf32, #tpu.memory_space<vmem>>, vector<32x128xf32>
    tpu.vector_store %arg7[%c0_3, %c0_4], %2 {strides = array<i32>} : memref<32x128xf32, #tpu.memory_space<vmem>>, vector<32x128xf32>,
    %c0_5 = arith.constant 0 : index
    %c0_6 = arith.constant 0 : index
    %4 = vector.load %arg3[%c0_5, %c0_6] : memref<128x128xf32, #tpu.memory_space<vmem>>, vector<128x128xf32>
    %cst_7 = arith.constant dense<0.000000e+00> : vector<32x128xf32>
    %5 = tpu.matmul %2, %4, %cst_7 {dimension_numbers = #tpu.dot_dimension_numbers<[1], [0], [0], [1], [0, 0, 1, 1], [], []>} : vector<32x128xf32>, vector<128x128xf32>, vector<32x128xf32> -> vector<32x128xf32>
    %c0_8 = arith.constant 0 : index
    %c0_9 = arith.constant 0 : index
    %6 = vector.load %arg4[%c0_8, %c0_9] : memref<1x128xf32, #tpu.memory_space<vmem>>, vector<1x128xf32>
    %7 = vector.broadcast %6 : vector<1x128xf32> to vector<32x128xf32>
    %8 = arith.addf %5, %7 : vector<32x128xf32>
    %cst_10 = arith.constant 0.000000e+00 : f32
    %9 = vector.broadcast %cst_10 : f32 to vector<32x128xf32>
    %10 = arith.maximumf %8, %9 : vector<32x128xf32>
    %c0_11 = arith.constant 0 : index
    %c0_12 = arith.constant 0 : index
    %11 = vector.load %arg5[%c0_11, %c0_12] : memref<128x128xf32, #tpu.memory_space<vmem>>, vector<128x128xf32>
    %cst_13 = arith.constant dense<0.000000e+00> : vector<32x128xf32>
    %12 = tpu.matmul %10, %11, %cst_13 {dimension_numbers = #tpu.dot_dimension_numbers<[1], [0], [0], [1], [0, 0, 1, 1], [], []>} : vector<32x128xf32>, vector<128x128xf32>, vector<32x128xf32> -> vector<32x128xf32>
    %c0_14 = arith.constant 0 : index
    %c0_15 = arith.constant 0 : index
    %13 = vector.load %arg6[%c0_14, %c0_15] : memref<1x128xf32, #tpu.memory_space<vmem>>, vector<1x128xf32>
    %14 = vector.broadcast %13 : vector<1x128xf32> to vector<32x128xf32>
    %15 = arith.addf %12, %14 : vector<32x128xf32>
    %cst_16 = arith.constant 0.000000e+00 : f32
    %16 = vector.broadcast %cst_16 : f32 to vector<32x128xf32>
    %17 = arith.maximumf %15, %16 : vector<32x128xf32>
    %c0_17 = arith.constant 0 : index
    %c0_18 = arith.constant 0 : index
    %18 = vector.load %arg8[%c0_17, %c0_18] : memref<32x128xf32, #tpu.memory_space<vmem>>, vector<32x128xf32>
    tpu.vector_store %arg8[%c0_17, %c0_18], %17 {strides = array<i32>} : memref<32x128xf32, #tpu.memory_space<vmem>>, vector<32x128xf32>,
    return
  }
  func.func @transform_0(%arg0: i32) -> (i32, i32) {
    %c0_i32 = arith.constant 0 : i32
    %c0_i32_0 = arith.constant 0 : i32
    return %arg0, %c0_i32 : i32, i32
  }
  func.func @transform_1(%arg0: i32) -> (i32, i32) {
    %c0_i32 = arith.constant 0 : i32
    %c0_i32_0 = arith.constant 0 : i32
    %c0_i32_1 = arith.constant 0 : i32
    return %c0_i32, %c0_i32_0 : i32, i32
  }
  func.func @transform_2(%arg0: i32) -> (i32, i32) {
    %c0_i32 = arith.constant 0 : i32
    %c0_i32_0 = arith.constant 0 : i32
    %c0_i32_1 = arith.constant 0 : i32
    return %c0_i32, %c0_i32_0 : i32, i32
  }
  func.func @transform_3(%arg0: i32) -> (i32, i32) {
    %c0_i32 = arith.constant 0 : i32
    %c0_i32_0 = arith.constant 0 : i32
    %c0_i32_1 = arith.constant 0 : i32
    return %c0_i32, %c0_i32_0 : i32, i32
  }
  func.func @transform_4(%arg0: i32) -> (i32, i32) {
    %c0_i32 = arith.constant 0 : i32
    %c0_i32_0 = arith.constant 0 : i32
    %c0_i32_1 = arith.constant 0 : i32
    return %c0_i32, %c0_i32_0 : i32, i32
  }
  func.func @transform_5(%arg0: i32) -> (i32, i32) {
    %c0_i32 = arith.constant 0 : i32
    %c0_i32_0 = arith.constant 0 : i32
    %c0_i32_1 = arith.constant 0 : i32
    return %c0_i32, %c0_i32_0 : i32, i32
  }
  func.func @transform_6(%arg0: i32) -> (i32, i32) {
    %c0_i32 = arith.constant 0 : i32
    %c0_i32_0 = arith.constant 0 : i32
    return %arg0, %c0_i32 : i32, i32
  }
  func.func @transform_7(%arg0: i32) -> (i32, i32) {
    %c0_i32 = arith.constant 0 : i32
    %c0_i32_0 = arith.constant 0 : i32
    return %arg0, %c0_i32 : i32, i32
  }
}

</mosaic_0001>

<bundles_post_ra>
// kernel: tpu_custom_call.1
= control target key start
LH: loop header
LB: loop body
LE: loop exit
PB: predicated region body
PF: predicated region fallthrough
CT: control target
= control target key end

     0   :  { %s1716_s0 = inlined_call_operand.hbm [shape: f32[64,128], index: 0, kind: input, shape index: {}]   ;;  %s1717_s1 = inlined_call_operand.hbm [shape: f32[128,128], index: 1, kind: input, shape index: {}]   ;;  %s1718_s2 = inlined_call_operand.hbm [shape: f32[128,128], index: 2, kind: input, shape index: {}]   ;;  %s1719_s3 = inlined_call_operand.vmem [shape: f32[1,128], index: 3, kind: input, shape index: {}]   ;;  %s1720_s4 = inlined_call_operand.hbm [shape: f32[128,128], index: 4, kind: input, shape index: {}]   ;;  %s1721_s5 = inlined_call_operand.vmem [shape: f32[1,128], index: 5, kind: input, shape index: {}]   ;;  %s1722_s6 = inlined_call_operand.hbm [shape: f32[64,128], index: 6, kind: output, shape index: {0}]   ;;  %s1723_s7 = inlined_call_operand.hbm [shape: f32[64,128], index: 7, kind: output, shape index: {1}]  }
   0x1   :  { %1730 = sst [smem:[#allocation18_spill]] %s1717_s1 }
   0x2   :  { %13 = vsyncpa [#allocation3], 0 }
   0x3   :  { %15 = vsyncpa [#allocation3 + $0x1], 0 }
   0x4   :  { %16 = vsyncpa [#allocation6], 0 }
   0x5   :  { %17 = vsyncpa [#allocation9], 0 }
   0x6   :  { %18 = vsyncpa [#allocation4], 0 }
   0x7   :  { %20 = vsyncpa [#allocation4 + $0x1], 0 }
   0x8   :  { %21 = vsyncpa [#allocation12], 0 }
   0x9   :  { %23 = vsyncpa [#allocation12 + $0x1], 0  ;;  %s1442_s24 = smov 0   ;;  %s1444_s25 = smov 0  }
   0xa   :  { %s1446_s26 = smov 0   ;;  %s1448_s27 = smov 0  }
   0xb LB: > { %s1463_s28 = sadd.s32 4294967295, %s1390_s27   ;;  %s861_s29 = sadd.s32 4294967294, %s1390_s27   ;;  %s1390_s27 = sphi %s1448_s27, %s1752_s27   ;;  %s1386_s26 = sphi %s1446_s26, %s1751_s26   ;;  %s1382_s25 = sphi %s1444_s25, %s1750_s25   ;;  %s1378_s24 = sphi %s1442_s24, %s1749_s24  }
   0xc   : > { %p49_p0 = scmp.ne.s32.totalorder %s1382_s25, %s1378_s24  ;;  %p1724_p1 = scmp.eq.s32.totalorder %s1463_s28, 0 }
   0xd   : > { %p178_p2 = scmp.eq.s32.totalorder %s1463_s28, 1  ;;  %p184_p3 = scmp.eq.s32.totalorder %s861_s29, 1 }
   0xe   : > { %p1472_p4 = por %p1724_p1, %p49_p0  ;;  %p862_p5 = scmp.ge.s32.totalorder %s1390_s27, 1 }
   0xf   : > { %p1477_p6 = por %p184_p3, %p49_p0  ;;  %p217_p7 = scmp.lt.s32.totalorder %s1390_s27, 3 }
  0x10   : > { %s1731_s30 = scalar_select %p1472_p4, 1, 0 }
  0x11   : > { %s1732_s8 = scalar_select %p1477_p6, 1, 0 }
  0x12   : > { %p1482_p8 = pnand %p862_p5, %p217_p7  ;;  %s1392_s10 = smov [#allocation5]  }
  0x13   : > { %s229_s11 = sshll.u32 %s1392_s10, 4  ;;  %s1393_s13 = smov [#allocation7]   ;;  %s230_s11 = int_to_ptr.vmem [resolvable:$true] %s229_s11 }
  0x14   : > { %s1733_s9 = scalar_select %p1482_p8, 1, 0 }
  0x15   : > { %p1114_p9 = pneg %p1482_p8  ;;  %s242_s14 = sshll.u32 %s1393_s13, 4  ;;  %s243_s14 = int_to_ptr.vmem [resolvable:$true] %s242_s14 }
  0x16   : > { %s1394_s15 = smov [#allocation8]   ;;  %s1193_s17 = scalar_lea.vmem %s230_s11, 2048 }
  0x17   : > { %p1491_p11 = pnand %p1114_p9, %p1724_p1  ;;  %s258_s16 = sshll.u32 %s1394_s15, 4  ;;  %s259_s16 = int_to_ptr.vmem [resolvable:$true] %s258_s16 }
  0x18   : > { %p1194_p13 = scmp.ne.s32.totalorder %s230_s11, %s1193_s17  ;;  %p1201_p5 = scmp.lt.s32.totalorder %s230_s11, %s230_s11 }
  0x19   : > { %p1184_p12 = pneg %p1491_p11  ;;  %p1202_p7 = scmp.lt.s32.totalorder %s1193_s17, %s1193_s17 }
  0x1b   : > { %p1196_p0 = pnand %p1194_p13, %p1184_p12  ;;  %p1203_p9 = por %p1202_p7, %p1201_p5 }
  0x1d   : > { %p1197_p3 = pneg %p1196_p0 }
  0x1f   : > { %p1204_p10 = pnand %p1203_p9, %p1197_p3 }
  0x21   : > { %1207 = shalt.err (!%p1204_p10)
}
  0x22   : > { %s1725_s18 = smov 128   ;;  %s1726_s19 = smov 8  }
  0x23   : > { %s1735_s1 = sld [smem:[#allocation18_spill]]  ;;  %s1219_s22 = scalar_lea.vmem %s243_s14, 2048 }
  0x24   : > { %p1220_p13 = scmp.ne.s32.totalorder %s243_s14, %s1219_s22  ;;  %p1227_p3 = scmp.lt.s32.totalorder %s243_s14, %s243_s14 }
  0x25   : > { %p1228_p10 = scmp.lt.s32.totalorder %s1219_s22, %s1219_s22 }
  0x26   : > { %p1222_p0 = pnand %p1220_p13, %p1184_p12 }
  0x27   : > { %p1229_p7 = por %p1228_p10, %p1227_p3 }
  0x28   : > { %p1223_p5 = pneg %p1222_p0 }
  0x29   : > { %1117 = dma.hbm_to_vmem [thread:$0]  (!%p1491_p11), %s1735_s1, 2048, %s230_s11, [#allocation6], %s1725_s18, %s1725_s18, %s1726_s19  }
  0x2a   : > { %p1230_p9 = pnand %p1229_p7, %p1223_p5 }
  0x2c   : > { %1233 = shalt.err (!%p1230_p9)
}
  0x2d   : > { %1120 = dma.hbm_to_vmem [thread:$0]  (!%p1491_p11), %s1718_s2, 2048, %s243_s14, [#allocation6], %s1725_s18, %s1725_s18, %s1726_s19  }
  0x2e   : > { %s1245_s10 = scalar_lea.vmem %s259_s16, 2048  ;;  %p1253_p3 = scmp.lt.s32.totalorder %s259_s16, %s259_s16 }
  0x2f   : > { %p1246_p1 = scmp.ne.s32.totalorder %s259_s16, %s1245_s10  ;;  %p1254_p5 = scmp.lt.s32.totalorder %s1245_s10, %s1245_s10 }
  0x31   : > { %p1248_p13 = pnand %p1246_p1, %p1184_p12  ;;  %p1255_p10 = por %p1254_p5, %p1253_p3 }
  0x33   : > { %p1249_p0 = pneg %p1248_p13 }
  0x35   : > { %p1256_p7 = pnand %p1255_p10, %p1249_p0 }
  0x37   : > { %1259 = shalt.err (!%p1256_p7)
}
  0x38   : > { %1123 = dma.hbm_to_vmem [thread:$0]  (!%p1491_p11), %s1720_s4, 2048, %s259_s16, [#allocation9], %s1725_s18, %s1725_s18, %s1726_s19  }
  0x39   : > { %s1531_s14 = sadd.s32 1, %s1390_s27   ;;  %s36_s15 = sadd.s32 1, %s1386_s26 }
  0x3a   : > { %s33_s12 = ssub.s32 %s1390_s27, %s1531_s14  ;;  %p43_p12 = scmp.ne.s32.totalorder %s1386_s26, %s1382_s25 }
  0x3b   : > { %p34_p1 = scmp.eq.s32.totalorder %s33_s12, 0  ;;  %p44_p9 = scmp.eq.s32.totalorder %s1390_s27, 0 }
  0x3c   : > { %p1138_p13 = scmp.lt.s32.totalorder %s1390_s27, 2  ;;  %p1545_p3 = por %p178_p2, %p43_p12 }
  0x3d   : > { %s1541_s17 = scalar_select %p34_p1, %s1386_s26, %s36_s15  }
  0x3e   : > { %p45_p0 = por %p44_p9, %p43_p12  ;;  %s275_s21 = sand.u32 1, %s1386_s26  }
  0x3f   : > { %s1736_s20 = scalar_select %p1545_p3, 1, 0 }
  0x40   : > { %s887_s22 = sshll.u32 %s1390_s27, 9  ;;  %s867_s16 = sshll.u32 %s275_s21, 5 }
  0x41   : > { %s1554_s10 = scalar_lea.hbm %s1716_s0, %s887_s22  ;;  %s279_s11 = scalar_lea.vmem [#allocation2], %s867_s16 }
  0x42   : > { %s286_s13 = sshll.u32 %s279_s11, 4  ;;  %p1556_p11 = pnand %p1138_p13, %p45_p0  ;;  %s1560_s13 = int_to_ptr.vmem [resolvable:$true] %s286_s13 }
  0x43   : > { %s1562_s15 = scalar_lea.sflag [#allocation3], %s275_s21  ;;  %s1260_s18 = scalar_lea.hbm %s1554_s10, 512 }
  0x44   : > { %p1261_p2 = scmp.ne.s32.totalorder %s1554_s10, %s1260_s18  ;;  %p1262_p5 = pneg %p1556_p11 }
  0x45   : > { %s1265_s16 = scalar_lea.hbm %s1716_s0, 1024  ;;  %p1266_p1 = scmp.lt.s32.totalorder %s1554_s10, %s1716_s0 }
  0x46   : > { %p1263_p10 = pnand %p1262_p5, %p1261_p2  ;;  %p1267_p12 = scmp.lt.s32.totalorder %s1265_s16, %s1260_s18 }
  0x48   : > { %p1264_p7 = pneg %p1263_p10  ;;  %p1268_p9 = por %p1267_p12, %p1266_p1 }
  0x4a   : > { %p1269_p13 = pnand %p1268_p9, %p1264_p7 }
  0x4c   : > { %1272 = shalt.err (!%p1269_p13)
}
  0x4d   : > { %s1273_s21 = scalar_lea.vmem %s1560_s13, 512  ;;  %s1397_s19 = smov [#allocation2]  }
  0x4e   : > { %p1274_p0 = scmp.ne.s32.totalorder %s1560_s13, %s1273_s21  ;;  %s1278_s1 = sshll.u32 %s1397_s19, 4  ;;  %s1279_s1 = int_to_ptr.vmem [resolvable:$false] %s1278_s1 }
  0x4f   : > { %s1280_s22 = scalar_lea.vmem %s1279_s1, 1024  ;;  %p1281_p10 = scmp.lt.s32.totalorder %s1560_s13, %s1279_s1 }
  0x50   : > { %p1276_p6 = pnand %p1274_p0, %p1262_p5  ;;  %p1282_p3 = scmp.lt.s32.totalorder %s1280_s22, %s1273_s21 }
  0x52   : > { %p1277_p2 = pneg %p1276_p6  ;;  %p1283_p4 = por %p1282_p3, %p1281_p10 }
  0x54   : > { %p1284_p8 = pnand %p1283_p4, %p1277_p2 }
  0x56   : > { %1287 = shalt.err (!%p1284_p8)
}
  0x57   : > { %s1738_s18 = smov 8   ;;  %s1739_s23 = smov 128  }
  0x58   : > { %1127 = dma.hbm_to_vmem [thread:$0]  (!%p1556_p11), %s1554_s10, 512, %s1560_s13, %s1562_s15, %s1739_s23, %s1739_s23, %s1738_s18  }
  0x59   : > { %p1740_p6 = scmp.ne.s32.totalorder %s1733_s9, 0 }
  0x5a   : > { %s1589_s19 = sand.u32 (!%p1740_p6), 1, %s1382_s25   ;;  %p1741_p4 = scmp.ne.s32.totalorder (!%p1740_p6), %s1731_s30, 0 }
  0x5b   : > { %298 = sbr.rel (%p1740_p6) target bundleno = 749 (0x2ed), region = 44  ;;  %s1592_s1 = sshll.u32 (!%p1740_p6), %s1589_s19, 5 }
  0x5c   : > { %s301_s12 = scalar_lea.sflag (!%p1740_p6), [#allocation3], %s1589_s19  ;;  %s1596_s16 = scalar_lea.vmem (!%p1740_p6), [#allocation2], %s1592_s1 }
  0x60   : > { %1357 = dma.done.wait (%p1741_p4), %s301_s12, 512  }
  0x61   : > { %1359 = vsyncadd (%p1741_p4), %s301_s12, 4294966784  ;;  %p1742_p8 = scmp.eq.s32.totalorder %s1463_s28, 0 }
  0x63   : > { %1361 = dma.done.wait (%p1742_p8), [#allocation6], 4096   ;;  %p1743_p3 = pmov %p1742_p8 }
  0x65   : > { %1363 = vsyncadd (%p1743_p3), [#allocation6], 4294963200  ;;  %p1744_p11 = pmov %p1743_p3 }
  0x66   : > { %p1745_p5 = pmov %p1743_p3 }
  0x67   : > { %1365 = dma.done.wait (%p1744_p11), [#allocation9], 2048  }
  0x68   : > { %1367 = vsyncadd (%p1745_p5), [#allocation9], 4294965248  ;;  %v374_v0 = vld [vmem:[#allocation5 + $0x78] sm:$0xff]  ;;  %v373_v1 = vld [vmem:[#allocation5 + $0x70] sm:$0xff]  ;;  %s1615_s30 = scalar_lea.vmem [#allocation10], %s1592_s1  ;;  %s888_s15 = sshll.u32 %s1463_s28, 9 }
  0x69   : > { %950 = vmatprep.subr.mxu0 %v374_v0  ;;  %v372_v2 = vld [vmem:[#allocation5 + $0x68] sm:$0xff]  ;;  %v371_v3 = vld [vmem:[#allocation5 + $0x60] sm:$0xff]  ;;  %v370_v5 = vld [vmem:[#allocation5 + $0x58] sm:$0xff]  ;;  %s711_s13 = sshll.u32 %s1615_s30, 4  ;;  %s1633_s21 = scalar_lea.hbm %s1722_s6, %s888_s15  ;;  %s1625_s13 = int_to_ptr.vmem [resolvable:$true] %s711_s13 }
  0x6a   : > { %951 = vmatpush3.msra.mxu0 %v374_v0  ;;  %v355_v4 = vld [vmem:[%s1596_s16] sm:$0xff]  ;;  %v479_v6 = vld [vmem:[#allocation7 + $0x78] sm:$0xff]  ;;  %v478_v7 = vld [vmem:[#allocation7 + $0x70] sm:$0xff]  ;;  %s693_s22 = scalar_lea.sflag [#allocation4], %s1589_s19  ;;  %s1288_s18 = scalar_lea.vmem %s1625_s13, 512 }
  0x6b   : > { %952 = vmatprep.subr.mxu0 %v373_v1  ;;  %982 = vmatprep.mubr.f32.mxu0 %v355_v4  ;;  %v369_v8 = vld [vmem:[#allocation5 + $0x50] sm:$0xff]  ;;  %v477_v9 = vld [vmem:[#allocation7 + $0x68] sm:$0xff]  ;;  %v476_v11 = vld [vmem:[#allocation7 + $0x60] sm:$0xff]  ;;  %p1289_p7 = scmp.ne.s32.totalorder %s1625_s13, %s1288_s18  ;;  %p1746_p1 = scmp.ne.s32.totalorder %s1736_s20, 0 }
  0x6c   : > { %953 = vmatpush3.msra.mxu0 %v373_v1  ;;  %988 = vmatprep.subr.mxu1 %v479_v6  ;;  %v368_v10 = vld [vmem:[#allocation5 + $0x48] sm:$0xff]  ;;  %v367_v12 = vld [vmem:[#allocation5 + $0x40] sm:$0xff]  ;;  %v475_v13 = vld [vmem:[#allocation7 + $0x58] sm:$0xff]  ;;  %s1398_s23 = smov [#allocation10]  }
  0x6d   : > { %954 = vmatprep.subr.mxu0 %v372_v2  ;;  %989 = vmatpush3.msra.mxu1 %v479_v6  ;;  %v366_v14 = vld [vmem:[#allocation5 + $0x38] sm:$0xff]  ;;  %v474_v15 = vld [vmem:[#allocation7 + $0x50] sm:$0xff]  ;;  %v473_v17 = vld [vmem:[#allocation7 + $0x48] sm:$0xff]  ;;  %p1290_p12 = pnand %p1289_p7, %p1746_p1  ;;  %s1292_s12 = sshll.u32 %s1398_s23, 4  ;;  %s1293_s12 = int_to_ptr.vmem [resolvable:$false] %s1292_s12 }
  0x6e   : > { %955 = vmatpush3.msra.mxu0 %v372_v2  ;;  %990 = vmatprep.subr.mxu1 %v478_v7  ;;  %v365_v16 = vld [vmem:[#allocation5 + $0x30] sm:$0xff]  ;;  %v364_v18 = vld [vmem:[#allocation5 + $0x28] sm:$0xff]  ;;  %v472_v19 = vld [vmem:[#allocation7 + $0x40] sm:$0xff]  ;;  %p1295_p13 = scmp.lt.s32.totalorder %s1625_s13, %s1293_s12 }
  0x6f   : > { %956 = vmatprep.subr.mxu0 %v371_v3  ;;  %991 = vmatpush3.msra.mxu1 %v478_v7  ;;  %v363_v20 = vld [vmem:[#allocation5 + $0x20] sm:$0xff]  ;;  %v471_v21 = vld [vmem:[#allocation7 + $0x38] sm:$0xff]  ;;  %v470_v23 = vld [vmem:[#allocation7 + $0x30] sm:$0xff]  ;;  %p1291_p9 = pneg %p1290_p12 }
  0x70   : > { %957 = vmatpush3.msra.mxu0 %v371_v3  ;;  %992 = vmatprep.subr.mxu1 %v477_v9  ;;  %v362_v22 = vld [vmem:[#allocation5 + $0x18] sm:$0xff]  ;;  %v361_v24 = vld [vmem:[#allocation5 + $0x10] sm:$0xff]  ;;  %v469_v25 = vld [vmem:[#allocation7 + $0x28] sm:$0xff] }
  0x71   : > { %958 = vmatprep.subr.mxu0 %v370_v5  ;;  %993 = vmatpush3.msra.mxu1 %v477_v9  ;;  %v360_v26 = vld [vmem:[#allocation5 + $0x8] sm:$0xff]  ;;  %v468_v27 = vld [vmem:[#allocation7 + $0x20] sm:$0xff]  ;;  %v467_v29 = vld [vmem:[#allocation7 + $0x18] sm:$0xff] }
  0x72   : > { %959 = vmatpush3.msra.mxu0 %v370_v5  ;;  %994 = vmatprep.subr.mxu1 %v476_v11  ;;  %v359_v28 = vld [vmem:[#allocation5] sm:$0xff]  ;;  %v356_v30 = vld [vmem:[%s1596_s16 + $0x8] sm:$0xff]  ;;  %v466_v31 = vld [vmem:[#allocation7 + $0x10] sm:$0xff] }
  0x73   : > { %960 = vmatprep.subr.mxu0 %v369_v8  ;;  %995 = vmatpush3.msra.mxu1 %v476_v11  ;;  %v357_v32 = vld [vmem:[%s1596_s16 + $0x10] sm:$0xff]  ;;  %v358_v33 = vld [vmem:[%s1596_s16 + $0x18] sm:$0xff]  ;;  %v465_v34 = vld [vmem:[#allocation7 + $0x8] sm:$0xff]  ;;  %s1294_s16 = scalar_lea.vmem %s1293_s12, 1024 }
  0x74   : > { %961 = vmatpush3.msra.mxu0 %v369_v8  ;;  %996 = vmatprep.subr.mxu1 %v475_v13  ;;  %v464_v35 = vld [vmem:[#allocation7] sm:$0xff]  ;;  %v591_v36 = vld [vmem:[#allocation8 + $0x78] sm:$0xff]  ;;  %v590_v37 = vld [vmem:[#allocation8 + $0x70] sm:$0xff]  ;;  %p1296_p0 = scmp.lt.s32.totalorder %s1294_s16, %s1288_s18 }
  0x75   : > { %962 = vmatprep.subr.mxu0 %v368_v10  ;;  %997 = vmatpush3.msra.mxu1 %v475_v13  ;;  %v589_v38 = vld [vmem:[#allocation8 + $0x68] sm:$0xff]  ;;  %v588_v39 = vld [vmem:[#allocation8 + $0x60] sm:$0xff]  ;;  %v587_v40 = vld [vmem:[#allocation8 + $0x58] sm:$0xff] }
  0x76   : > { %963 = vmatpush3.msra.mxu0 %v368_v10  ;;  %998 = vmatprep.subr.mxu1 %v474_v15  ;;  %v586_v41 = vld [vmem:[#allocation8 + $0x50] sm:$0xff]  ;;  %v585_v42 = vld [vmem:[#allocation8 + $0x48] sm:$0xff]  ;;  %v584_v43 = vld [vmem:[#allocation8 + $0x40] sm:$0xff]  ;;  %p1297_p2 = por %p1296_p0, %p1295_p13 }
  0x77   : > { %964 = vmatprep.subr.mxu0 %v367_v12  ;;  %999 = vmatpush3.msra.mxu1 %v474_v15  ;;  %v583_v44 = vld [vmem:[#allocation8 + $0x38] sm:$0xff]  ;;  %v582_v45 = vld [vmem:[#allocation8 + $0x30] sm:$0xff]  ;;  %v581_v46 = vld [vmem:[#allocation8 + $0x28] sm:$0xff] }
  0x78   : > { %965 = vmatpush3.msra.mxu0 %v367_v12  ;;  %1000 = vmatprep.subr.mxu1 %v473_v17  ;;  %v580_v47 = vld [vmem:[#allocation8 + $0x20] sm:$0xff]  ;;  %v579_v52 = vld [vmem:[#allocation8 + $0x18] sm:$0xff]  ;;  %v578_v53 = vld [vmem:[#allocation8 + $0x10] sm:$0xff]  ;;  %p1298_p10 = pnand %p1297_p2, %p1291_p9 }
  0x79   : > { %966 = vmatprep.subr.mxu0 %v366_v14  ;;  %1001 = vmatpush3.msra.mxu1 %v473_v17  ;;  %v577_v54 = vld [vmem:[#allocation8 + $0x8] sm:$0xff]  ;;  %v576_v55 = vld [vmem:[#allocation8] sm:$0xff] }
  0x7a   : > { %967 = vmatpush3.msra.mxu0 %v366_v14  ;;  %1002 = vmatprep.subr.mxu1 %v472_v19  ;;  %v877_v56 = vld [vmem:[%s1719_s3] ss:$0 sm:$0xff] }
  0x7b   : > { %968 = vmatprep.subr.mxu0 %v365_v16  ;;  %1003 = vmatpush3.msra.mxu1 %v472_v19 }
  0x7c   : > { %969 = vmatpush3.msra.mxu0 %v365_v16  ;;  %1004 = vmatprep.subr.mxu1 %v471_v21 }
  0x7d   : > { %970 = vmatprep.subr.mxu0 %v364_v18  ;;  %1005 = vmatpush3.msra.mxu1 %v471_v21 }
  0x7e   : > { %971 = vmatpush3.msra.mxu0 %v364_v18  ;;  %1006 = vmatprep.subr.mxu1 %v470_v23 }
  0x7f   : > { %972 = vmatprep.subr.mxu0 %v363_v20  ;;  %1007 = vmatpush3.msra.mxu1 %v470_v23 }
  0x80   : > { %973 = vmatpush3.msra.mxu0 %v363_v20  ;;  %1008 = vmatprep.subr.mxu1 %v469_v25 }
  0x81   : > { %974 = vmatprep.subr.mxu0 %v362_v22  ;;  %1009 = vmatpush3.msra.mxu1 %v469_v25 }
  0x82   : > { %975 = vmatpush3.msra.mxu0 %v362_v22  ;;  %1010 = vmatprep.subr.mxu1 %v468_v27 }
  0x83   : > { %976 = vmatprep.subr.mxu0 %v361_v24  ;;  %1011 = vmatpush3.msra.mxu1 %v468_v27 }
  0x84   : > { %977 = vmatpush3.msra.mxu0 %v361_v24  ;;  %1012 = vmatprep.subr.mxu1 %v467_v29 }
  0x85   : > { %978 = vmatprep.subr.mxu0 %v360_v26  ;;  %1013 = vmatpush3.msra.mxu1 %v467_v29 }
  0x86   : > { %979 = vmatpush3.msra.mxu0 %v360_v26  ;;  %1014 = vmatprep.subr.mxu1 %v466_v31 }
  0x87   : > { %980 = vmatprep.subr.mxu0 %v359_v28  ;;  %1015 = vmatpush3.msra.mxu1 %v466_v31 }
  0x88   : > { %981 = vmatpush3.msra.mxu0 %v359_v28  ;;  %1016 = vmatprep.subr.mxu1 %v465_v34 }
  0x89   : > { %983 = vmatmul.mubr.f32.vlgmr.msra.gmra.mxu0 %v356_v30  ;;  %1017 = vmatpush3.msra.mxu1 %v465_v34 }
  0x8a   : > { %985 = vmatprep.mubr.f32.mxu0 %v357_v32  ;;  %1018 = vmatprep.subr.mxu1 %v464_v35 }
  0x8b   : > { %1019 = vmatpush3.msra.mxu1 %v464_v35  ;;  %1026 = vmatprep.subr.mxu0 %v591_v36 }
  0x8c   : > { %1064 = vmatprep.subr.mxu1 %v591_v36  ;;  %1027 = vmatpush3.msra.mxu0 %v591_v36 }
  0x8d   : > { %986 = vmatmul.mubr.f32.gmra.mxu0 %v358_v33  ;;  %1028 = vmatprep.subr.mxu0 %v590_v37 }
  0x8e   : > { %1029 = vmatpush3.msra.mxu0 %v590_v37 }
  0x8f   : > { %1030 = vmatprep.subr.mxu0 %v589_v38 }
  0x90   : > { %1031 = vmatpush3.msra.mxu0 %v589_v38 }
  0x91   : > { %1032 = vmatprep.subr.mxu0 %v588_v39 }
  0x92   : > { %1033 = vmatpush3.msra.mxu0 %v588_v39 }
  0x93   : > { %1034 = vmatprep.subr.mxu0 %v587_v40 }
  0x94   : > { %1035 = vmatpush3.msra.mxu0 %v587_v40 }
  0x95   : > { %1036 = vmatprep.subr.mxu0 %v586_v41 }
  0x96   : > { %1037 = vmatpush3.msra.mxu0 %v586_v41 }
  0x97   : > { %1038 = vmatprep.subr.mxu0 %v585_v42 }
  0x98   : > { %1039 = vmatpush3.msra.mxu0 %v585_v42 }
  0x99   : > { %1040 = vmatprep.subr.mxu0 %v584_v43 }
  0x9a   : > { %1041 = vmatpush3.msra.mxu0 %v584_v43 }
  0x9b   : > { %1042 = vmatprep.subr.mxu0 %v583_v44 }
  0x9c   : > { %1043 = vmatpush3.msra.mxu0 %v583_v44 }
  0x9d   : > { %1044 = vmatprep.subr.mxu0 %v582_v45 }
  0x9e   : > { %1045 = vmatpush3.msra.mxu0 %v582_v45 }
  0x9f   : > { %1046 = vmatprep.subr.mxu0 %v581_v46 }
  0xa0   : > { %1047 = vmatpush3.msra.mxu0 %v581_v46 }
  0xa1   : > { %1048 = vmatprep.subr.mxu0 %v580_v47 }
  0xa2   : > { %1049 = vmatpush3.msra.mxu0 %v580_v47 }
  0xa3   : > { %1050 = vmatprep.subr.mxu0 %v579_v52 }
  0xa4   : > { %1051 = vmatpush3.msra.mxu0 %v579_v52 }
  0xa5   : > { %1052 = vmatprep.subr.mxu0 %v578_v53 }
  0xa6   : > { %1053 = vmatpush3.msra.mxu0 %v578_v53 }
  0xa7   : > { %1054 = vmatprep.subr.mxu0 %v577_v54 }
  0xa8   : > { %1055 = vmatpush3.msra.mxu0 %v577_v54 }
  0xa9   : > { %1056 = vmatprep.subr.mxu0 %v576_v55 }
  0xaa   : > { %1057 = vmatpush3.msra.mxu0 %v576_v55 }
 0x149   : > { %v984_v48 = vpop.f32.mrf.mxu0 }
 0x14a   : > { %461 = vst [vmem:[%s1615_s30 + $0x8] sm:$0xff] %v984_v48 }
 0x14b   : > { %v441_v49 = vpop.f32.mrf.mxu0 }
 0x14c   : > { %460 = vst [vmem:[%s1615_s30] sm:$0xff] %v441_v49  ;;  %1020 = vmatprep.mubr.f32.mxu1 %v441_v49 }
 0x14d   : > { %v987_v50 = vpop.f32.mrf.mxu0  ;;  %1021 = vmatmul.mubr.f32.vlgmr.msra.gmra.mxu1 %v984_v48 }
 0x14e   : > { %463 = vst [vmem:[%s1615_s30 + $0x18] sm:$0xff] %v987_v50  ;;  %1080 = vmatpush3.msra.mxu1 %v591_v36 }
 0x14f   : > { %v451_v51 = vpop.f32.mrf.mxu0  ;;  %1065 = vmatprep.subr.mxu1 %v590_v37 }
 0x150   : > { %462 = vst [vmem:[%s1615_s30 + $0x10] sm:$0xff] %v451_v51  ;;  %1023 = vmatprep.mubr.f32.mxu1 %v451_v51  ;;  %1081 = vmatpush3.msra.mxu1 %v590_v37 }
 0x151   : > { %1024 = vmatmul.mubr.f32.gmra.mxu1 %v987_v50  ;;  %1066 = vmatprep.subr.mxu1 %v589_v38 }
 0x152   : > { %1082 = vmatpush3.msra.mxu1 %v589_v38 }
 0x153   : > { %1067 = vmatprep.subr.mxu1 %v588_v39 }
 0x154   : > { %1083 = vmatpush3.msra.mxu1 %v588_v39 }
 0x155   : > { %1068 = vmatprep.subr.mxu1 %v587_v40 }
 0x156   : > { %1084 = vmatpush3.msra.mxu1 %v587_v40 }
 0x157   : > { %1069 = vmatprep.subr.mxu1 %v586_v41 }
 0x158   : > { %1085 = vmatpush3.msra.mxu1 %v586_v41 }
 0x159   : > { %1070 = vmatprep.subr.mxu1 %v585_v42 }
 0x15a   : > { %1086 = vmatpush3.msra.mxu1 %v585_v42 }
 0x15b   : > { %1071 = vmatprep.subr.mxu1 %v584_v43 }
 0x15c   : > { %1087 = vmatpush3.msra.mxu1 %v584_v43 }
 0x15d   : > { %1072 = vmatprep.subr.mxu1 %v583_v44 }
 0x15e   : > { %1088 = vmatpush3.msra.mxu1 %v583_v44 }
 0x15f   : > { %1073 = vmatprep.subr.mxu1 %v582_v45 }
 0x160   : > { %1089 = vmatpush3.msra.mxu1 %v582_v45 }
 0x161   : > { %1074 = vmatprep.subr.mxu1 %v581_v46 }
 0x162   : > { %1090 = vmatpush3.msra.mxu1 %v581_v46 }
 0x163   : > { %1075 = vmatprep.subr.mxu1 %v580_v47 }
 0x164   : > { %1091 = vmatpush3.msra.mxu1 %v580_v47 }
 0x165   : > { %1076 = vmatprep.subr.mxu1 %v579_v52 }
 0x166   : > { %1092 = vmatpush3.msra.mxu1 %v579_v52 }
 0x167   : > { %1077 = vmatprep.subr.mxu1 %v578_v53 }
 0x168   : > { %1093 = vmatpush3.msra.mxu1 %v578_v53 }
 0x169   : > { %1078 = vmatprep.subr.mxu1 %v577_v54 }
 0x16a   : > { %1094 = vmatpush3.msra.mxu1 %v577_v54 }
 0x16b   : > { %1079 = vmatprep.subr.mxu1 %v576_v55 }
 0x16c   : > { %1095 = vmatpush3.msra.mxu1 %v576_v55 }
 0x20d   : > { %v1022_v57 = vpop.f32.mrf.mxu1 }
 0x20e   : > { %v559_v58 = vadd.f32 %v1022_v57, %v877_v56 }
 0x20f   : > { %v553_v59 = vpop.f32.mrf.mxu1 }
 0x210   : > { %v554_v60 = vadd.f32 %v877_v56, %v553_v59  ;;  %v573_v63 = vmax.f32 %v559_v58, 0.0 }
 0x211   : > { %v1025_v61 = vpop.f32.mrf.mxu1 }
 0x212   : > { %v572_v62 = vmax.f32 %v554_v60, 0.0  ;;  %v569_v0 = vadd.f32 %v1025_v61, %v877_v56 }
 0x213   : > { %v563_v1 = vpop.f32.mrf.mxu1 }
 0x214   : > { %v564_v2 = vadd.f32 %v877_v56, %v563_v1  ;;  %1058 = vmatprep.mubr.f32.mxu0 %v572_v62  ;;  %v575_v4 = vmax.f32 %v569_v0, 0.0 }
 0x215   : > { %1059 = vmatmul.mubr.f32.vlgmr.msra.gmra.mxu0 %v573_v63 }
 0x216   : > { %v574_v3 = vmax.f32 %v564_v2, 0.0 }
 0x218   : > { %1061 = vmatprep.mubr.f32.mxu1 %v574_v3 }
 0x219   : > { %1062 = vmatmul.mubr.f32.vlgmr.msra.gmra.mxu1 %v575_v4 }
 0x21a   : > { %1301 = shalt.err (!%p1298_p10)
}
 0x21b   : > { %s1302_s30 = scalar_lea.hbm %s1633_s21, 512  ;;  %s1306_s29 = scalar_lea.hbm %s1722_s6, 1024 }
 0x21c   : > { %p1303_p6 = scmp.ne.s32.totalorder %s1633_s21, %s1302_s30  ;;  %p1307_p3 = scmp.lt.s32.totalorder %s1633_s21, %s1722_s6 }
 0x21d   : > { %p1308_p11 = scmp.lt.s32.totalorder %s1306_s29, %s1302_s30 }
 0x21e   : > { %p1304_p4 = pnand %p1303_p6, %p1746_p1 }
 0x21f   : > { %p1309_p5 = por %p1308_p11, %p1307_p3 }
 0x220   : > { %p1305_p8 = pneg %p1304_p4 }
 0x222   : > { %p1310_p7 = pnand %p1309_p5, %p1305_p8 }
 0x224   : > { %1313 = shalt.err (!%p1310_p7)
}
 0x225   : > { %s1399_s18 = smov 128   ;;  %s1400_s12 = smov 8   ;;  %v878_v5 = vld [vmem:[%s1721_s5] ss:$0 sm:$0xff] }
 0x226   : > { %1110 = dma.vmem_to_hbm [thread:$0]  (%p1746_p1), %s1625_s13, 512, %s1633_s21, %s693_s22, %s1399_s18, %s1399_s18, %s1400_s12  }
 0x227   : > { %s351_s30 = scalar_lea.vmem [#allocation11], %s1592_s1  ;;  %s1672_s1 = scalar_lea.hbm %s1723_s7, %s888_s15 }
 0x228   : > { %s727_s10 = sshll.u32 %s351_s30, 4  ;;  %s698_s22 = scalar_lea.sflag [#allocation12], %s1589_s19  ;;  %s1665_s10 = int_to_ptr.vmem [resolvable:$true] %s727_s10 }
 0x229   : > { %s1314_s29 = scalar_lea.vmem %s1665_s10, 512  ;;  %s1401_s11 = smov [#allocation11]  }
 0x22a   : > { %p1315_p12 = scmp.ne.s32.totalorder %s1665_s10, %s1314_s29  ;;  %s1318_s23 = sshll.u32 %s1401_s11, 4  ;;  %s1319_s23 = int_to_ptr.vmem [resolvable:$false] %s1318_s23 }
 0x22b   : > { %s1320_s16 = scalar_lea.vmem %s1319_s23, 1024  ;;  %p1321_p0 = scmp.lt.s32.totalorder %s1665_s10, %s1319_s23 }
 0x22c   : > { %p1316_p9 = pnand %p1315_p12, %p1746_p1  ;;  %p1322_p2 = scmp.lt.s32.totalorder %s1320_s16, %s1314_s29 }
 0x22e   : > { %p1317_p13 = pneg %p1316_p9  ;;  %p1323_p10 = por %p1322_p2, %p1321_p0 }
 0x230   : > { %p1324_p6 = pnand %p1323_p10, %p1317_p13 }
 0x2d5   : > { %v1060_v6 = vpop.f32.mrf.mxu0 }
 0x2d6   : > { %v671_v7 = vadd.f32 %v1060_v6, %v878_v5 }
 0x2d7   : > { %v665_v8 = vpop.f32.mrf.mxu0 }
 0x2d8   : > { %v685_v9 = vmax.f32 %v671_v7, 0.0  ;;  %v666_v10 = vadd.f32 %v878_v5, %v665_v8 }
 0x2d9   : > { %v1063_v11 = vpop.f32.mrf.mxu1 }
 0x2da   : > { %689 = vst [vmem:[%s351_s30 + $0x8] sm:$0xff] %v685_v9  ;;  %v684_v12 = vmax.f32 %v666_v10, 0.0  ;;  %v681_v13 = vadd.f32 %v1063_v11, %v878_v5 }
 0x2db   : > { %v675_v14 = vpop.f32.mrf.mxu1 }
 0x2dc   : > { %688 = vst [vmem:[%s351_s30] sm:$0xff] %v684_v12  ;;  %v687_v15 = vmax.f32 %v681_v13, 0.0  ;;  %v676_v16 = vadd.f32 %v878_v5, %v675_v14 }
 0x2de   : > { %691 = vst [vmem:[%s351_s30 + $0x18] sm:$0xff] %v687_v15  ;;  %v686_v17 = vmax.f32 %v676_v16, 0.0 }
 0x2e0   : > { %690 = vst [vmem:[%s351_s30 + $0x10] sm:$0xff] %v686_v17 }
 0x2e1   : > { %1327 = shalt.err (!%p1324_p6)
}
 0x2e2   : > { %s1328_s28 = scalar_lea.hbm %s1672_s1, 512  ;;  %s1332_s9 = scalar_lea.hbm %s1723_s7, 1024 }
 0x2e3   : > { %p1329_p4 = scmp.ne.s32.totalorder %s1672_s1, %s1328_s28  ;;  %p1333_p11 = scmp.lt.s32.totalorder %s1672_s1, %s1723_s7 }
 0x2e4   : > { %p1334_p5 = scmp.lt.s32.totalorder %s1332_s9, %s1328_s28 }
 0x2e5   : > { %p1330_p8 = pnand %p1329_p4, %p1746_p1 }
 0x2e6   : > { %p1335_p7 = por %p1334_p5, %p1333_p11 }
 0x2e7   : > { %p1331_p3 = pneg %p1330_p8 }
 0x2e9   : > { %p1336_p12 = pnand %p1335_p7, %p1331_p3 }
 0x2eb   : > { %1339 = shalt.err (!%p1336_p12)
}
 0x2ec   : > { %1111 = dma.vmem_to_hbm [thread:$0]  (%p1746_p1), %s1665_s10, 512, %s1672_s1, %s698_s22, %s1399_s18, %s1399_s18, %s1400_s12  }
 0x2ed PF: > { %s742_s21 = sand.u32 1, %s1378_s24   ;;  %p1747_p9 = scmp.ne.s32.totalorder %s1732_s8, 0 }
 0x2ee   : > { %p1748_p13 = scmp.ge.s32.totalorder %s1390_s27, 2  ;;  %s743_s29 = scalar_lea.sflag [#allocation4], %s742_s21 }
 0x2f0   : > { %p1129_p0 = pnand %p1748_p13, %p1747_p9 }
 0x2f2   : > { %p1130_p2 = pneg %p1129_p0 }
 0x2f4   : > { %1369 = dma.done.wait (%p1130_p2), %s743_s29, 512  }
 0x2f5   : > { %1371 = vsyncadd (%p1130_p2), %s743_s29, 4294966784  ;;  %s752_s11 = scalar_lea.sflag [#allocation12], %s742_s21 }
 0x2f6   : > { %1373 = dma.done.wait (%p1130_p2), %s752_s11, 512  }
 0x2f7   : > { %1375 = vsyncadd (%p1130_p2), %s752_s11, 4294966784  ;;  %p26_p1 = scmp.ge.s32.totalorder %s1531_s14, 4   ;;  %s1749_s24 = smov %s1382_s25 }
 0x2f8   : > { %s1750_s25 = smov %s1386_s26  ;;  %s1751_s26 = smov %s1541_s17 }
 0x2f9   : > { %s1752_s27 = smov %s1531_s14  ;;  %28 = sbr.rel (!%p26_p1) target bundleno = 11 (0xb), region = 118 }
 0x2fe   :  { %757 = vsyncpa [#allocation3], 1 }
 0x2ff   :  { %759 = vsyncpa [#allocation3 + $0x1], 1 }
 0x300   :  { %760 = vsyncpa [#allocation6], 1 }
 0x301   :  { %761 = vsyncpa [#allocation9], 1 }
 0x302   :  { %762 = vsyncpa [#allocation4], 1 }
 0x303   :  { %764 = vsyncpa [#allocation4 + $0x1], 1 }
 0x304   :  { %765 = vsyncpa [#allocation12], 1 }
 0x305   :  { %767 = vsyncpa [#allocation12 + $0x1], 1 }

// kernel: tpu_custom_call.1
= control target key start
LH: loop header
LB: loop body
LE: loop exit
PB: predicated region body
PF: predicated region fallthrough
CT: control target
= control target key end

     0   :  { %s1716_s0 = inlined_call_operand.hbm [shape: f32[64,128], index: 0, kind: input, shape index: {}]   ;;  %s1717_s1 = inlined_call_operand.hbm [shape: f32[128,128], index: 1, kind: input, shape index: {}]   ;;  %s1718_s2 = inlined_call_operand.hbm [shape: f32[128,128], index: 2, kind: input, shape index: {}]   ;;  %s1719_s3 = inlined_call_operand.vmem [shape: f32[1,128], index: 3, kind: input, shape index: {}]   ;;  %s1720_s4 = inlined_call_operand.hbm [shape: f32[128,128], index: 4, kind: input, shape index: {}]   ;;  %s1721_s5 = inlined_call_operand.vmem [shape: f32[1,128], index: 5, kind: input, shape index: {}]   ;;  %s1722_s6 = inlined_call_operand.hbm [shape: f32[64,128], index: 6, kind: output, shape index: {0}]   ;;  %s1723_s7 = inlined_call_operand.hbm [shape: f32[64,128], index: 7, kind: output, shape index: {1}]  }
   0x1   :  { %1730 = sst [smem:[#allocation18_spill]] %s1717_s1 }
   0x2   :  { %13 = vsyncpa [#allocation3], 0 }
   0x3   :  { %15 = vsyncpa [#allocation3 + $0x1], 0 }
   0x4   :  { %16 = vsyncpa [#allocation6], 0 }
   0x5   :  { %17 = vsyncpa [#allocation9], 0 }
   0x6   :  { %18 = vsyncpa [#allocation4], 0 }
   0x7   :  { %20 = vsyncpa [#allocation4 + $0x1], 0 }
   0x8   :  { %21 = vsyncpa [#allocation12], 0 }
   0x9   :  { %23 = vsyncpa [#allocation12 + $0x1], 0  ;;  %s1442_s24 = smov 0   ;;  %s1444_s25 = smov 0  }
   0xa   :  { %s1446_s26 = smov 0   ;;  %s1448_s27 = smov 0  }
   0xb LB: > { %s1463_s28 = sadd.s32 4294967295, %s1390_s27   ;;  %s861_s29 = sadd.s32 4294967294, %s1390_s27   ;;  %s1390_s27 = sphi %s1448_s27, %s1752_s27   ;;  %s1386_s26 = sphi %s1446_s26, %s1751_s26   ;;  %s1382_s25 = sphi %s1444_s25, %s1750_s25   ;;  %s1378_s24 = sphi %s1442_s24, %s1749_s24  }
   0xc   : > { %p49_p0 = scmp.ne.s32.totalorder %s1382_s25, %s1378_s24  ;;  %p1724_p1 = scmp.eq.s32.totalorder %s1463_s28, 0 }
   0xd   : > { %p178_p2 = scmp.eq.s32.totalorder %s1463_s28, 1  ;;  %p184_p3 = scmp.eq.s32.totalorder %s861_s29, 1 }
   0xe   : > { %p1472_p4 = por %p1724_p1, %p49_p0  ;;  %p862_p5 = scmp.ge.s32.totalorder %s1390_s27, 1 }
   0xf   : > { %p1477_p6 = por %p184_p3, %p49_p0  ;;  %p217_p7 = scmp.lt.s32.totalorder %s1390_s27, 3 }
  0x10   : > { %s1731_s30 = scalar_select %p1472_p4, 1, 0 }
  0x11   : > { %s1732_s8 = scalar_select %p1477_p6, 1, 0 }
  0x12   : > { %p1482_p8 = pnand %p862_p5, %p217_p7  ;;  %s1392_s10 = smov [#allocation5]  }
  0x13   : > { %s229_s11 = sshll.u32 %s1392_s10, 4  ;;  %s1393_s13 = smov [#allocation7]   ;;  %s230_s11 = int_to_ptr.vmem [resolvable:$true] %s229_s11 }
  0x14   : > { %s1733_s9 = scalar_select %p1482_p8, 1, 0 }
  0x15   : > { %p1114_p9 = pneg %p1482_p8  ;;  %s242_s14 = sshll.u32 %s1393_s13, 4  ;;  %s243_s14 = int_to_ptr.vmem [resolvable:$true] %s242_s14 }
  0x16   : > { %s1394_s15 = smov [#allocation8]   ;;  %s1193_s17 = scalar_lea.vmem %s230_s11, 2048 }
  0x17   : > { %p1491_p11 = pnand %p1114_p9, %p1724_p1  ;;  %s258_s16 = sshll.u32 %s1394_s15, 4  ;;  %s259_s16 = int_to_ptr.vmem [resolvable:$true] %s258_s16 }
  0x18   : > { %p1194_p13 = scmp.ne.s32.totalorder %s230_s11, %s1193_s17  ;;  %p1201_p5 = scmp.lt.s32.totalorder %s230_s11, %s230_s11 }
  0x19   : > { %p1184_p12 = pneg %p1491_p11  ;;  %p1202_p7 = scmp.lt.s32.totalorder %s1193_s17, %s1193_s17 }
  0x1b   : > { %p1196_p0 = pnand %p1194_p13, %p1184_p12  ;;  %p1203_p9 = por %p1202_p7, %p1201_p5 }
  0x1d   : > { %p1197_p3 = pneg %p1196_p0 }
  0x1f   : > { %p1204_p10 = pnand %p1203_p9, %p1197_p3 }
  0x21   : > { %1207 = shalt.err (!%p1204_p10)
}
  0x22   : > { %s1725_s18 = smov 128   ;;  %s1726_s19 = smov 8  }
  0x23   : > { %s1735_s1 = sld [smem:[#allocation18_spill]]  ;;  %s1219_s22 = scalar_lea.vmem %s243_s14, 2048 }
  0x24   : > { %p1220_p13 = scmp.ne.s32.totalorder %s243_s14, %s1219_s22  ;;  %p1227_p3 = scmp.lt.s32.totalorder %s243_s14, %s243_s14 }
  0x25   : > { %p1228_p10 = scmp.lt.s32.totalorder %s1219_s22, %s1219_s22 }
  0x26   : > { %p1222_p0 = pnand %p1220_p13, %p1184_p12 }
  0x27   : > { %p1229_p7 = por %p1228_p10, %p1227_p3 }
  0x28   : > { %p1223_p5 = pneg %p1222_p0 }
  0x29   : > { %1117 = dma.hbm_to_vmem [thread:$0]  (!%p1491_p11), %s1735_s1, 2048, %s230_s11, [#allocation6], %s1725_s18, %s1725_s18, %s1726_s19  }
  0x2a   : > { %p1230_p9 = pnand %p1229_p7, %p1223_p5 }
  0x2c   : > { %1233 = shalt.err (!%p1230_p9)
}
  0x2d   : > { %1120 = dma.hbm_to_vmem [thread:$0]  (!%p1491_p11), %s1718_s2, 2048, %s243_s14, [#allocation6], %s1725_s18, %s1725_s18, %s1726_s19  }
  0x2e   : > { %s1245_s10 = scalar_lea.vmem %s259_s16, 2048  ;;  %p1253_p3 = scmp.lt.s32.totalorder %s259_s16, %s259_s16 }
  0x2f   : > { %p1246_p1 = scmp.ne.s32.totalorder %s259_s16, %s1245_s10  ;;  %p1254_p5 = scmp.lt.s32.totalorder %s1245_s10, %s1245_s10 }
  0x31   : > { %p1248_p13 = pnand %p1246_p1, %p1184_p12  ;;  %p1255_p10 = por %p1254_p5, %p1253_p3 }
  0x33   : > { %p1249_p0 = pneg %p1248_p13 }
  0x35   : > { %p1256_p7 = pnand %p1255_p10, %p1249_p0 }
  0x37   : > { %1259 = shalt.err (!%p1256_p7)
}
  0x38   : > { %1123 = dma.hbm_to_vmem [thread:$0]  (!%p1491_p11), %s1720_s4, 2048, %s259_s16, [#allocation9], %s1725_s18, %s1725_s18, %s1726_s19  }
  0x39   : > { %s1531_s14 = sadd.s32 1, %s1390_s27   ;;  %s36_s15 = sadd.s32 1, %s1386_s26 }
  0x3a   : > { %s33_s12 = ssub.s32 %s1390_s27, %s1531_s14  ;;  %p43_p12 = scmp.ne.s32.totalorder %s1386_s26, %s1382_s25 }
  0x3b   : > { %p34_p1 = scmp.eq.s32.totalorder %s33_s12, 0  ;;  %p44_p9 = scmp.eq.s32.totalorder %s1390_s27, 0 }
  0x3c   : > { %p1138_p13 = scmp.lt.s32.totalorder %s1390_s27, 2  ;;  %p1545_p3 = por %p178_p2, %p43_p12 }
  0x3d   : > { %s1541_s17 = scalar_select %p34_p1, %s1386_s26, %s36_s15  }
  0x3e   : > { %p45_p0 = por %p44_p9, %p43_p12  ;;  %s275_s21 = sand.u32 1, %s1386_s26  }
  0x3f   : > { %s1736_s20 = scalar_select %p1545_p3, 1, 0 }
  0x40   : > { %s887_s22 = sshll.u32 %s1390_s27, 9  ;;  %s867_s16 = sshll.u32 %s275_s21, 5 }
  0x41   : > { %s1554_s10 = scalar_lea.hbm %s1716_s0, %s887_s22  ;;  %s279_s11 = scalar_lea.vmem [#allocation2], %s867_s16 }
  0x42   : > { %s286_s13 = sshll.u32 %s279_s11, 4  ;;  %p1556_p11 = pnand %p1138_p13, %p45_p0  ;;  %s1560_s13 = int_to_ptr.vmem [resolvable:$true] %s286_s13 }
  0x43   : > { %s1562_s15 = scalar_lea.sflag [#allocation3], %s275_s21  ;;  %s1260_s18 = scalar_lea.hbm %s1554_s10, 512 }
  0x44   : > { %p1261_p2 = scmp.ne.s32.totalorder %s1554_s10, %s1260_s18  ;;  %p1262_p5 = pneg %p1556_p11 }
  0x45   : > { %s1265_s16 = scalar_lea.hbm %s1716_s0, 1024  ;;  %p1266_p1 = scmp.lt.s32.totalorder %s1554_s10, %s1716_s0 }
  0x46   : > { %p1263_p10 = pnand %p1262_p5, %p1261_p2  ;;  %p1267_p12 = scmp.lt.s32.totalorder %s1265_s16, %s1260_s18 }
  0x48   : > { %p1264_p7 = pneg %p1263_p10  ;;  %p1268_p9 = por %p1267_p12, %p1266_p1 }
  0x4a   : > { %p1269_p13 = pnand %p1268_p9, %p1264_p7 }
  0x4c   : > { %1272 = shalt.err (!%p1269_p13)
}
  0x4d   : > { %s1273_s21 = scalar_lea.vmem %s1560_s13, 512  ;;  %s1397_s19 = smov [#allocation2]  }
  0x4e   : > { %p1274_p0 = scmp.ne.s32.totalorder %s1560_s13, %s1273_s21  ;;  %s1278_s1 = sshll.u32 %s1397_s19, 4  ;;  %s1279_s1 = int_to_ptr.vmem [resolvable:$false] %s1278_s1 }
  0x4f   : > { %s1280_s22 = scalar_lea.vmem %s1279_s1, 1024  ;;  %p1281_p10 = scmp.lt.s32.totalorder %s1560_s13, %s1279_s1 }
  0x50   : > { %p1276_p6 = pnand %p1274_p0, %p1262_p5  ;;  %p1282_p3 = scmp.lt.s32.totalorder %s1280_s22, %s1273_s21 }
  0x52   : > { %p1277_p2 = pneg %p1276_p6  ;;  %p1283_p4 = por %p1282_p3, %p1281_p10 }
  0x54   : > { %p1284_p8 = pnand %p1283_p4, %p1277_p2 }
  0x56   : > { %1287 = shalt.err (!%p1284_p8)
}
  0x57   : > { %s1738_s18 = smov 8   ;;  %s1739_s23 = smov 128  }
  0x58   : > { %1127 = dma.hbm_to_vmem [thread:$0]  (!%p1556_p11), %s1554_s10, 512, %s1560_s13, %s1562_s15, %s1739_s23, %s1739_s23, %s1738_s18  }
  0x59   : > { %p1740_p6 = scmp.ne.s32.totalorder %s1733_s9, 0 }
  0x5a   : > { %s1589_s19 = sand.u32 (!%p1740_p6), 1, %s1382_s25   ;;  %p1741_p4 = scmp.ne.s32.totalorder (!%p1740_p6), %s1731_s30, 0 }
  0x5b   : > { %298 = sbr.rel (%p1740_p6) target bundleno = 749 (0x2ed), region = 44  ;;  %s1592_s1 = sshll.u32 (!%p1740_p6), %s1589_s19, 5 }
  0x5c   : > { %s301_s12 = scalar_lea.sflag (!%p1740_p6), [#allocation3], %s1589_s19  ;;  %s1596_s16 = scalar_lea.vmem (!%p1740_p6), [#allocation2], %s1592_s1 }
  0x60   : > { %1357 = dma.done.wait (%p1741_p4), %s301_s12, 512  }
  0x61   : > { %1359 = vsyncadd (%p1741_p4), %s301_s12, 4294966784  ;;  %p1742_p8 = scmp.eq.s32.totalorder %s1463_s28, 0 }
  0x63   : > { %1361 = dma.done.wait (%p1742_p8), [#allocation6], 4096   ;;  %p1743_p3 = pmov %p1742_p8 }
  0x65   : > { %1363 = vsyncadd (%p1743_p3), [#allocation6], 4294963200  ;;  %p1744_p11 = pmov %p1743_p3 }
  0x66   : > { %p1745_p5 = pmov %p1743_p3 }
  0x67   : > { %1365 = dma.done.wait (%p1744_p11), [#allocation9], 2048  }
  0x68   : > { %1367 = vsyncadd (%p1745_p5), [#allocation9], 4294965248  ;;  %v374_v0 = vld [vmem:[#allocation5 + $0x78] sm:$0xff]  ;;  %v373_v1 = vld [vmem:[#allocation5 + $0x70] sm:$0xff]  ;;  %s1615_s30 = scalar_lea.vmem [#allocation10], %s1592_s1  ;;  %s888_s15 = sshll.u32 %s1463_s28, 9 }
  0x69   : > { %950 = vmatprep.subr.mxu0 %v374_v0  ;;  %v372_v2 = vld [vmem:[#allocation5 + $0x68] sm:$0xff]  ;;  %v371_v3 = vld [vmem:[#allocation5 + $0x60] sm:$0xff]  ;;  %v370_v5 = vld [vmem:[#allocation5 + $0x58] sm:$0xff]  ;;  %s711_s13 = sshll.u32 %s1615_s30, 4  ;;  %s1633_s21 = scalar_lea.hbm %s1722_s6, %s888_s15  ;;  %s1625_s13 = int_to_ptr.vmem [resolvable:$true] %s711_s13 }
  0x6a   : > { %951 = vmatpush3.msra.mxu0 %v374_v0  ;;  %v355_v4 = vld [vmem:[%s1596_s16] sm:$0xff]  ;;  %v479_v6 = vld [vmem:[#allocation7 + $0x78] sm:$0xff]  ;;  %v478_v7 = vld [vmem:[#allocation7 + $0x70] sm:$0xff]  ;;  %s693_s22 = scalar_lea.sflag [#allocation4], %s1589_s19  ;;  %s1288_s18 = scalar_lea.vmem %s1625_s13, 512 }
  0x6b   : > { %952 = vmatprep.subr.mxu0 %v373_v1  ;;  %982 = vmatprep.mubr.f32.mxu0 %v355_v4  ;;  %v369_v8 = vld [vmem:[#allocation5 + $0x50] sm:$0xff]  ;;  %v477_v9 = vld [vmem:[#allocation7 + $0x68] sm:$0xff]  ;;  %v476_v11 = vld [vmem:[#allocation7 + $0x60] sm:$0xff]  ;;  %p1289_p7 = scmp.ne.s32.totalorder %s1625_s13, %s1288_s18  ;;  %p1746_p1 = scmp.ne.s32.totalorder %s1736_s20, 0 }
  0x6c   : > { %953 = vmatpush3.msra.mxu0 %v373_v1  ;;  %988 = vmatprep.subr.mxu1 %v479_v6  ;;  %v368_v10 = vld [vmem:[#allocation5 + $0x48] sm:$0xff]  ;;  %v367_v12 = vld [vmem:[#allocation5 + $0x40] sm:$0xff]  ;;  %v475_v13 = vld [vmem:[#allocation7 + $0x58] sm:$0xff]  ;;  %s1398_s23 = smov [#allocation10]  }
  0x6d   : > { %954 = vmatprep.subr.mxu0 %v372_v2  ;;  %989 = vmatpush3.msra.mxu1 %v479_v6  ;;  %v366_v14 = vld [vmem:[#allocation5 + $0x38] sm:$0xff]  ;;  %v474_v15 = vld [vmem:[#allocation7 + $0x50] sm:$0xff]  ;;  %v473_v17 = vld [vmem:[#allocation7 + $0x48] sm:$0xff]  ;;  %p1290_p12 = pnand %p1289_p7, %p1746_p1  ;;  %s1292_s12 = sshll.u32 %s1398_s23, 4  ;;  %s1293_s12 = int_to_ptr.vmem [resolvable:$false] %s1292_s12 }
  0x6e   : > { %955 = vmatpush3.msra.mxu0 %v372_v2  ;;  %990 = vmatprep.subr.mxu1 %v478_v7  ;;  %v365_v16 = vld [vmem:[#allocation5 + $0x30] sm:$0xff]  ;;  %v364_v18 = vld [vmem:[#allocation5 + $0x28] sm:$0xff]  ;;  %v472_v19 = vld [vmem:[#allocation7 + $0x40] sm:$0xff]  ;;  %p1295_p13 = scmp.lt.s32.totalorder %s1625_s13, %s1293_s12 }
  0x6f   : > { %956 = vmatprep.subr.mxu0 %v371_v3  ;;  %991 = vmatpush3.msra.mxu1 %v478_v7  ;;  %v363_v20 = vld [vmem:[#allocation5 + $0x20] sm:$0xff]  ;;  %v471_v21 = vld [vmem:[#allocation7 + $0x38] sm:$0xff]  ;;  %v470_v23 = vld [vmem:[#allocation7 + $0x30] sm:$0xff]  ;;  %p1291_p9 = pneg %p1290_p12 }
  0x70   : > { %957 = vmatpush3.msra.mxu0 %v371_v3  ;;  %992 = vmatprep.subr.mxu1 %v477_v9  ;;  %v362_v22 = vld [vmem:[#allocation5 + $0x18] sm:$0xff]  ;;  %v361_v24 = vld [vmem:[#allocation5 + $0x10] sm:$0xff]  ;;  %v469_v25 = vld [vmem:[#allocation7 + $0x28] sm:$0xff] }
  0x71   : > { %958 = vmatprep.subr.mxu0 %v370_v5  ;;  %993 = vmatpush3.msra.mxu1 %v477_v9  ;;  %v360_v26 = vld [vmem:[#allocation5 + $0x8] sm:$0xff]  ;;  %v468_v27 = vld [vmem:[#allocation7 + $0x20] sm:$0xff]  ;;  %v467_v29 = vld [vmem:[#allocation7 + $0x18] sm:$0xff] }
  0x72   : > { %959 = vmatpush3.msra.mxu0 %v370_v5  ;;  %994 = vmatprep.subr.mxu1 %v476_v11  ;;  %v359_v28 = vld [vmem:[#allocation5] sm:$0xff]  ;;  %v356_v30 = vld [vmem:[%s1596_s16 + $0x8] sm:$0xff]  ;;  %v466_v31 = vld [vmem:[#allocation7 + $0x10] sm:$0xff] }
  0x73   : > { %960 = vmatprep.subr.mxu0 %v369_v8  ;;  %995 = vmatpush3.msra.mxu1 %v476_v11  ;;  %v357_v32 = vld [vmem:[%s1596_s16 + $0x10] sm:$0xff]  ;;  %v358_v33 = vld [vmem:[%s1596_s16 + $0x18] sm:$0xff]  ;;  %v465_v34 = vld [vmem:[#allocation7 + $0x8] sm:$0xff]  ;;  %s1294_s16 = scalar_lea.vmem %s1293_s12, 1024 }
  0x74   : > { %961 = vmatpush3.msra.mxu0 %v369_v8  ;;  %996 = vmatprep.subr.mxu1 %v475_v13  ;;  %v464_v35 = vld [vmem:[#allocation7] sm:$0xff]  ;;  %v591_v36 = vld [vmem:[#allocation8 + $0x78] sm:$0xff]  ;;  %v590_v37 = vld [vmem:[#allocation8 + $0x70] sm:$0xff]  ;;  %p1296_p0 = scmp.lt.s32.totalorder %s1294_s16, %s1288_s18 }
  0x75   : > { %962 = vmatprep.subr.mxu0 %v368_v10  ;;  %997 = vmatpush3.msra.mxu1 %v475_v13  ;;  %v589_v38 = vld [vmem:[#allocation8 + $0x68] sm:$0xff]  ;;  %v588_v39 = vld [vmem:[#allocation8 + $0x60] sm:$0xff]  ;;  %v587_v40 = vld [vmem:[#allocation8 + $0x58] sm:$0xff] }
  0x76   : > { %963 = vmatpush3.msra.mxu0 %v368_v10  ;;  %998 = vmatprep.subr.mxu1 %v474_v15  ;;  %v586_v41 = vld [vmem:[#allocation8 + $0x50] sm:$0xff]  ;;  %v585_v42 = vld [vmem:[#allocation8 + $0x48] sm:$0xff]  ;;  %v584_v43 = vld [vmem:[#allocation8 + $0x40] sm:$0xff]  ;;  %p1297_p2 = por %p1296_p0, %p1295_p13 }
  0x77   : > { %964 = vmatprep.subr.mxu0 %v367_v12  ;;  %999 = vmatpush3.msra.mxu1 %v474_v15  ;;  %v583_v44 = vld [vmem:[#allocation8 + $0x38] sm:$0xff]  ;;  %v582_v45 = vld [vmem:[#allocation8 + $0x30] sm:$0xff]  ;;  %v581_v46 = vld [vmem:[#allocation8 + $0x28] sm:$0xff] }
  0x78   : > { %965 = vmatpush3.msra.mxu0 %v367_v12  ;;  %1000 = vmatprep.subr.mxu1 %v473_v17  ;;  %v580_v47 = vld [vmem:[#allocation8 + $0x20] sm:$0xff]  ;;  %v579_v52 = vld [vmem:[#allocation8 + $0x18] sm:$0xff]  ;;  %v578_v53 = vld [vmem:[#allocation8 + $0x10] sm:$0xff]  ;;  %p1298_p10 = pnand %p1297_p2, %p1291_p9 }
  0x79   : > { %966 = vmatprep.subr.mxu0 %v366_v14  ;;  %1001 = vmatpush3.msra.mxu1 %v473_v17  ;;  %v577_v54 = vld [vmem:[#allocation8 + $0x8] sm:$0xff]  ;;  %v576_v55 = vld [vmem:[#allocation8] sm:$0xff] }
  0x7a   : > { %967 = vmatpush3.msra.mxu0 %v366_v14  ;;  %1002 = vmatprep.subr.mxu1 %v472_v19  ;;  %v877_v56 = vld [vmem:[%s1719_s3] ss:$0 sm:$0xff] }
  0x7b   : > { %968 = vmatprep.subr.mxu0 %v365_v16  ;;  %1003 = vmatpush3.msra.mxu1 %v472_v19 }
  0x7c   : > { %969 = vmatpush3.msra.mxu0 %v365_v16  ;;  %1004 = vmatprep.subr.mxu1 %v471_v21 }
  0x7d   : > { %970 = vmatprep.subr.mxu0 %v364_v18  ;;  %1005 = vmatpush3.msra.mxu1 %v471_v21 }
  0x7e   : > { %971 = vmatpush3.msra.mxu0 %v364_v18  ;;  %1006 = vmatprep.subr.mxu1 %v470_v23 }
  0x7f   : > { %972 = vmatprep.subr.mxu0 %v363_v20  ;;  %1007 = vmatpush3.msra.mxu1 %v470_v23 }
  0x80   : > { %973 = vmatpush3.msra.mxu0 %v363_v20  ;;  %1008 = vmatprep.subr.mxu1 %v469_v25 }
  0x81   : > { %974 = vmatprep.subr.mxu0 %v362_v22  ;;  %1009 = vmatpush3.msra.mxu1 %v469_v25 }
  0x82   : > { %975 = vmatpush3.msra.mxu0 %v362_v22  ;;  %1010 = vmatprep.subr.mxu1 %v468_v27 }
  0x83   : > { %976 = vmatprep.subr.mxu0 %v361_v24  ;;  %1011 = vmatpush3.msra.mxu1 %v468_v27 }
  0x84   : > { %977 = vmatpush3.msra.mxu0 %v361_v24  ;;  %1012 = vmatprep.subr.mxu1 %v467_v29 }
  0x85   : > { %978 = vmatprep.subr.mxu0 %v360_v26  ;;  %1013 = vmatpush3.msra.mxu1 %v467_v29 }
  0x86   : > { %979 = vmatpush3.msra.mxu0 %v360_v26  ;;  %1014 = vmatprep.subr.mxu1 %v466_v31 }
  0x87   : > { %980 = vmatprep.subr.mxu0 %v359_v28  ;;  %1015 = vmatpush3.msra.mxu1 %v466_v31 }
  0x88   : > { %981 = vmatpush3.msra.mxu0 %v359_v28  ;;  %1016 = vmatprep.subr.mxu1 %v465_v34 }
  0x89   : > { %983 = vmatmul.mubr.f32.vlgmr.msra.gmra.mxu0 %v356_v30  ;;  %1017 = vmatpush3.msra.mxu1 %v465_v34 }
  0x8a   : > { %985 = vmatprep.mubr.f32.mxu0 %v357_v32  ;;  %1018 = vmatprep.subr.mxu1 %v464_v35 }
  0x8b   : > { %1019 = vmatpush3.msra.mxu1 %v464_v35  ;;  %1026 = vmatprep.subr.mxu0 %v591_v36 }
  0x8c   : > { %1064 = vmatprep.subr.mxu1 %v591_v36  ;;  %1027 = vmatpush3.msra.mxu0 %v591_v36 }
  0x8d   : > { %986 = vmatmul.mubr.f32.gmra.mxu0 %v358_v33  ;;  %1028 = vmatprep.subr.mxu0 %v590_v37 }
  0x8e   : > { %1029 = vmatpush3.msra.mxu0 %v590_v37 }
  0x8f   : > { %1030 = vmatprep.subr.mxu0 %v589_v38 }
  0x90   : > { %1031 = vmatpush3.msra.mxu0 %v589_v38 }
  0x91   : > { %1032 = vmatprep.subr.mxu0 %v588_v39 }
  0x92   : > { %1033 = vmatpush3.msra.mxu0 %v588_v39 }
  0x93   : > { %1034 = vmatprep.subr.mxu0 %v587_v40 }
  0x94   : > { %1035 = vmatpush3.msra.mxu0 %v587_v40 }
  0x95   : > { %1036 = vmatprep.subr.mxu0 %v586_v41 }
  0x96   : > { %1037 = vmatpush3.msra.mxu0 %v586_v41 }
  0x97   : > { %1038 = vmatprep.subr.mxu0 %v585_v42 }
  0x98   : > { %1039 = vmatpush3.msra.mxu0 %v585_v42 }
  0x99   : > { %1040 = vmatprep.subr.mxu0 %v584_v43 }
  0x9a   : > { %1041 = vmatpush3.msra.mxu0 %v584_v43 }
  0x9b   : > { %1042 = vmatprep.subr.mxu0 %v583_v44 }
  0x9c   : > { %1043 = vmatpush3.msra.mxu0 %v583_v44 }
  0x9d   : > { %1044 = vmatprep.subr.mxu0 %v582_v45 }
  0x9e   : > { %1045 = vmatpush3.msra.mxu0 %v582_v45 }
  0x9f   : > { %1046 = vmatprep.subr.mxu0 %v581_v46 }
  0xa0   : > { %1047 = vmatpush3.msra.mxu0 %v581_v46 }
  0xa1   : > { %1048 = vmatprep.subr.mxu0 %v580_v47 }
  0xa2   : > { %1049 = vmatpush3.msra.mxu0 %v580_v47 }
  0xa3   : > { %1050 = vmatprep.subr.mxu0 %v579_v52 }
  0xa4   : > { %1051 = vmatpush3.msra.mxu0 %v579_v52 }
  0xa5   : > { %1052 = vmatprep.subr.mxu0 %v578_v53 }
  0xa6   : > { %1053 = vmatpush3.msra.mxu0 %v578_v53 }
  0xa7   : > { %1054 = vmatprep.subr.mxu0 %v577_v54 }
  0xa8   : > { %1055 = vmatpush3.msra.mxu0 %v577_v54 }
  0xa9   : > { %1056 = vmatprep.subr.mxu0 %v576_v55 }
  0xaa   : > { %1057 = vmatpush3.msra.mxu0 %v576_v55 }
 0x149   : > { %v984_v48 = vpop.f32.mrf.mxu0 }
 0x14a   : > { %461 = vst [vmem:[%s1615_s30 + $0x8] sm:$0xff] %v984_v48 }
 0x14b   : > { %v441_v49 = vpop.f32.mrf.mxu0 }
 0x14c   : > { %460 = vst [vmem:[%s1615_s30] sm:$0xff] %v441_v49  ;;  %1020 = vmatprep.mubr.f32.mxu1 %v441_v49 }
 0x14d   : > { %v987_v50 = vpop.f32.mrf.mxu0  ;;  %1021 = vmatmul.mubr.f32.vlgmr.msra.gmra.mxu1 %v984_v48 }
 0x14e   : > { %463 = vst [vmem:[%s1615_s30 + $0x18] sm:$0xff] %v987_v50  ;;  %1080 = vmatpush3.msra.mxu1 %v591_v36 }
 0x14f   : > { %v451_v51 = vpop.f32.mrf.mxu0  ;;  %1065 = vmatprep.subr.mxu1 %v590_v37 }
 0x150   : > { %462 = vst [vmem:[%s1615_s30 + $0x10] sm:$0xff] %v451_v51  ;;  %1023 = vmatprep.mubr.f32.mxu1 %v451_v51  ;;  %1081 = vmatpush3.msra.mxu1 %v590_v37 }
 0x151   : > { %1024 = vmatmul.mubr.f32.gmra.mxu1 %v987_v50  ;;  %1066 = vmatprep.subr.mxu1 %v589_v38 }
 0x152   : > { %1082 = vmatpush3.msra.mxu1 %v589_v38 }
 0x153   : > { %1067 = vmatprep.subr.mxu1 %v588_v39 }
 0x154   : > { %1083 = vmatpush3.msra.mxu1 %v588_v39 }
 0x155   : > { %1068 = vmatprep.subr.mxu1 %v587_v40 }
 0x156   : > { %1084 = vmatpush3.msra.mxu1 %v587_v40 }
 0x157   : > { %1069 = vmatprep.subr.mxu1 %v586_v41 }
 0x158   : > { %1085 = vmatpush3.msra.mxu1 %v586_v41 }
 0x159   : > { %1070 = vmatprep.subr.mxu1 %v585_v42 }
 0x15a   : > { %1086 = vmatpush3.msra.mxu1 %v585_v42 }
 0x15b   : > { %1071 = vmatprep.subr.mxu1 %v584_v43 }
 0x15c   : > { %1087 = vmatpush3.msra.mxu1 %v584_v43 }
 0x15d   : > { %1072 = vmatprep.subr.mxu1 %v583_v44 }
 0x15e   : > { %1088 = vmatpush3.msra.mxu1 %v583_v44 }
 0x15f   : > { %1073 = vmatprep.subr.mxu1 %v582_v45 }
 0x160   : > { %1089 = vmatpush3.msra.mxu1 %v582_v45 }
 0x161   : > { %1074 = vmatprep.subr.mxu1 %v581_v46 }
 0x162   : > { %1090 = vmatpush3.msra.mxu1 %v581_v46 }
 0x163   : > { %1075 = vmatprep.subr.mxu1 %v580_v47 }
 0x164   : > { %1091 = vmatpush3.msra.mxu1 %v580_v47 }
 0x165   : > { %1076 = vmatprep.subr.mxu1 %v579_v52 }
 0x166   : > { %1092 = vmatpush3.msra.mxu1 %v579_v52 }
 0x167   : > { %1077 = vmatprep.subr.mxu1 %v578_v53 }
 0x168   : > { %1093 = vmatpush3.msra.mxu1 %v578_v53 }
 0x169   : > { %1078 = vmatprep.subr.mxu1 %v577_v54 }
 0x16a   : > { %1094 = vmatpush3.msra.mxu1 %v577_v54 }
 0x16b   : > { %1079 = vmatprep.subr.mxu1 %v576_v55 }
 0x16c   : > { %1095 = vmatpush3.msra.mxu1 %v576_v55 }
 0x20d   : > { %v1022_v57 = vpop.f32.mrf.mxu1 }
 0x20e   : > { %v559_v58 = vadd.f32 %v1022_v57, %v877_v56 }
 0x20f   : > { %v553_v59 = vpop.f32.mrf.mxu1 }
 0x210   : > { %v554_v60 = vadd.f32 %v877_v56, %v553_v59  ;;  %v573_v63 = vmax.f32 %v559_v58, 0.0 }
 0x211   : > { %v1025_v61 = vpop.f32.mrf.mxu1 }
 0x212   : > { %v572_v62 = vmax.f32 %v554_v60, 0.0  ;;  %v569_v0 = vadd.f32 %v1025_v61, %v877_v56 }
 0x213   : > { %v563_v1 = vpop.f32.mrf.mxu1 }
 0x214   : > { %v564_v2 = vadd.f32 %v877_v56, %v563_v1  ;;  %1058 = vmatprep.mubr.f32.mxu0 %v572_v62  ;;  %v575_v4 = vmax.f32 %v569_v0, 0.0 }
 0x215   : > { %1059 = vmatmul.mubr.f32.vlgmr.msra.gmra.mxu0 %v573_v63 }
 0x216   : > { %v574_v3 = vmax.f32 %v564_v2, 0.0 }
 0x218   : > { %1061 = vmatprep.mubr.f32.mxu1 %v574_v3 }
 0x219   : > { %1062 = vmatmul.mubr.f32.vlgmr.msra.gmra.mxu1 %v575_v4 }
 0x21a   : > { %1301 = shalt.err (!%p1298_p10)
}
 0x21b   : > { %s1302_s30 = scalar_lea.hbm %s1633_s21, 512  ;;  %s1306_s29 = scalar_lea.hbm %s1722_s6, 1024 }
 0x21c   : > { %p1303_p6 = scmp.ne.s32.totalorder %s1633_s21, %s1302_s30  ;;  %p1307_p3 = scmp.lt.s32.totalorder %s1633_s21, %s1722_s6 }
 0x21d   : > { %p1308_p11 = scmp.lt.s32.totalorder %s1306_s29, %s1302_s30 }
 0x21e   : > { %p1304_p4 = pnand %p1303_p6, %p1746_p1 }
 0x21f   : > { %p1309_p5 = por %p1308_p11, %p1307_p3 }
 0x220   : > { %p1305_p8 = pneg %p1304_p4 }
 0x222   : > { %p1310_p7 = pnand %p1309_p5, %p1305_p8 }
 0x224   : > { %1313 = shalt.err (!%p1310_p7)
}
 0x225   : > { %s1399_s18 = smov 128   ;;  %s1400_s12 = smov 8   ;;  %v878_v5 = vld [vmem:[%s1721_s5] ss:$0 sm:$0xff] }
 0x226   : > { %1110 = dma.vmem_to_hbm [thread:$0]  (%p1746_p1), %s1625_s13, 512, %s1633_s21, %s693_s22, %s1399_s18, %s1399_s18, %s1400_s12  }
 0x227   : > { %s351_s30 = scalar_lea.vmem [#allocation11], %s1592_s1  ;;  %s1672_s1 = scalar_lea.hbm %s1723_s7, %s888_s15 }
 0x228   : > { %s727_s10 = sshll.u32 %s351_s30, 4  ;;  %s698_s22 = scalar_lea.sflag [#allocation12], %s1589_s19  ;;  %s1665_s10 = int_to_ptr.vmem [resolvable:$true] %s727_s10 }
 0x229   : > { %s1314_s29 = scalar_lea.vmem %s1665_s10, 512  ;;  %s1401_s11 = smov [#allocation11]  }
 0x22a   : > { %p1315_p12 = scmp.ne.s32.totalorder %s1665_s10, %s1314_s29  ;;  %s1318_s23 = sshll.u32 %s1401_s11, 4  ;;  %s1319_s23 = int_to_ptr.vmem [resolvable:$false] %s1318_s23 }
 0x22b   : > { %s1320_s16 = scalar_lea.vmem %s1319_s23, 1024  ;;  %p1321_p0 = scmp.lt.s32.totalorder %s1665_s10, %s1319_s23 }
 0x22c   : > { %p1316_p9 = pnand %p1315_p12, %p1746_p1  ;;  %p1322_p2 = scmp.lt.s32.totalorder %s1320_s16, %s1314_s29 }
 0x22e   : > { %p1317_p13 = pneg %p1316_p9  ;;  %p1323_p10 = por %p1322_p2, %p1321_p0 }
 0x230   : > { %p1324_p6 = pnand %p1323_p10, %p1317_p13 }
 0x2d5   : > { %v1060_v6 = vpop.f32.mrf.mxu0 }
 0x2d6   : > { %v671_v7 = vadd.f32 %v1060_v6, %v878_v5 }
 0x2d7   : > { %v665_v8 = vpop.f32.mrf.mxu0 }
 0x2d8   : > { %v685_v9 = vmax.f32 %v671_v7, 0.0  ;;  %v666_v10 = vadd.f32 %v878_v5, %v665_v8 }
 0x2d9   : > { %v1063_v11 = vpop.f32.mrf.mxu1 }
 0x2da   : > { %689 = vst [vmem:[%s351_s30 + $0x8] sm:$0xff] %v685_v9  ;;  %v684_v12 = vmax.f32 %v666_v10, 0.0  ;;  %v681_v13 = vadd.f32 %v1063_v11, %v878_v5 }
 0x2db   : > { %v675_v14 = vpop.f32.mrf.mxu1 }
 0x2dc   : > { %688 = vst [vmem:[%s351_s30] sm:$0xff] %v684_v12  ;;  %v687_v15 = vmax.f32 %v681_v13, 0.0  ;;  %v676_v16 = vadd.f32 %v878_v5, %v675_v14 }
 0x2de   : > { %691 = vst [vmem:[%s351_s30 + $0x18] sm:$0xff] %v687_v15  ;;  %v686_v17 = vmax.f32 %v676_v16, 0.0 }
 0x2e0   : > { %690 = vst [vmem:[%s351_s30 + $0x10] sm:$0xff] %v686_v17 }
 0x2e1   : > { %1327 = shalt.err (!%p1324_p6)
}
 0x2e2   : > { %s1328_s28 = scalar_lea.hbm %s1672_s1, 512  ;;  %s1332_s9 = scalar_lea.hbm %s1723_s7, 1024 }
 0x2e3   : > { %p1329_p4 = scmp.ne.s32.totalorder %s1672_s1, %s1328_s28  ;;  %p1333_p11 = scmp.lt.s32.totalorder %s1672_s1, %s1723_s7 }
 0x2e4   : > { %p1334_p5 = scmp.lt.s32.totalorder %s1332_s9, %s1328_s28 }
 0x2e5   : > { %p1330_p8 = pnand %p1329_p4, %p1746_p1 }
 0x2e6   : > { %p1335_p7 = por %p1334_p5, %p1333_p11 }
 0x2e7   : > { %p1331_p3 = pneg %p1330_p8 }
 0x2e9   : > { %p1336_p12 = pnand %p1335_p7, %p1331_p3 }
 0x2eb   : > { %1339 = shalt.err (!%p1336_p12)
}
 0x2ec   : > { %1111 = dma.vmem_to_hbm [thread:$0]  (%p1746_p1), %s1665_s10, 512, %s1672_s1, %s698_s22, %s1399_s18, %s1399_s18, %s1400_s12  }
 0x2ed PF: > { %s742_s21 = sand.u32 1, %s1378_s24   ;;  %p1747_p9 = scmp.ne.s32.totalorder %s1732_s8, 0 }
 0x2ee   : > { %p1748_p13 = scmp.ge.s32.totalorder %s1390_s27, 2  ;;  %s743_s29 = scalar_lea.sflag [#allocation4], %s742_s21 }
 0x2f0   : > { %p1129_p0 = pnand %p1748_p13, %p1747_p9 }
 0x2f2   : > { %p1130_p2 = pneg %p1129_p0 }
 0x2f4   : > { %1369 = dma.done.wait (%p1130_p2), %s743_s29, 512  }
 0x2f5   : > { %1371 = vsyncadd (%p1130_p2), %s743_s29, 4294966784  ;;  %s752_s11 = scalar_lea.sflag [#allocation12], %s742_s21 }
 0x2f6   : > { %1373 = dma.done.wait (%p1130_p2), %s752_s11, 512  }
 0x2f7   : > { %1375 = vsyncadd (%p1130_p2), %s752_s11, 4294966784  ;;  %p26_p1 = scmp.ge.s32.totalorder %s1531_s14, 4   ;;  %s1749_s24 = smov %s1382_s25 }
 0x2f8   : > { %s1750_s25 = smov %s1386_s26  ;;  %s1751_s26 = smov %s1541_s17 }
 0x2f9   : > { %s1752_s27 = smov %s1531_s14  ;;  %28 = sbr.rel (!%p26_p1) target bundleno = 11 (0xb), region = 118 }
 0x2fe   :  { %757 = vsyncpa [#allocation3], 1 }
 0x2ff   :  { %759 = vsyncpa [#allocation3 + $0x1], 1 }
 0x300   :  { %760 = vsyncpa [#allocation6], 1 }
 0x301   :  { %761 = vsyncpa [#allocation9], 1 }
 0x302   :  { %762 = vsyncpa [#allocation4], 1 }
 0x303   :  { %764 = vsyncpa [#allocation4 + $0x1], 1 }
 0x304   :  { %765 = vsyncpa [#allocation12], 1 }
 0x305   :  { %767 = vsyncpa [#allocation12 + $0x1], 1 }

</bundles_post_ra>
